<compile_context>
chip_gen: v7x
topology: tpu7x:2x2x1
jax: 0.10.0
libtpu: 0.0.40
codegen_flags: <defaults>
</compile_context>

<pallas_src>
import jax
import jax.numpy as jnp
import numpy as np
from jax import lax
from jax.experimental import pallas as pl
from jax.experimental.pallas import tpu as pltpu


# ------------------------------ fused kernel --------------------------------

def _bottleneck_kernel(x_ref, xt_ref, xb_ref,
                       w1_ref, b1_ref, w2_ref, b2_ref, w3_ref, b3_ref,
                       o_ref):
    # x_ref : (1, Th, W, Cin)  tile of the input (also the residual)
    # xt_ref: (1, 1,  W, Cin)  row above the tile (clamped; zeroed in y1-space at t==0)
    # xb_ref: (1, 1,  W, Cin)  row below the tile (clamped; zeroed at t==last)
    # w1_ref: (Cin, P) bf16    1x1 conv1 weight, bn1 scale folded in
    # w2_ref: (3, 3P, P) bf16  3x3 conv2 weight packed per ky (kx taps on the K axis)
    # w3_ref: (P, Cout) bf16   1x1 conv3 weight, bn3 scale folded in
    # b*_ref: (1, C) f32       folded bn biases
    t = pl.program_id(1)
    n_t = pl.num_programs(1)
    _, Th, W, Cin = x_ref.shape
    P = w1_ref.shape[1]
    Cout = w3_ref.shape[1]
    cdt = w1_ref.dtype  # bf16 matmul operands; f32 accumulate / epilogue

    xv = x_ref[...]  # (1, Th, W, Cin) f32 — used for conv1 and the residual add

    # ---- stage 1: conv1 (1x1) + bn1 + relu on the tile plus 1-row halos --------
    xs = jnp.concatenate(
        [xt_ref[...].reshape(1, W, Cin),
         xv.reshape(Th, W, Cin),
         xb_ref[...].reshape(1, W, Cin)], axis=0)               # (Th+2, W, Cin)
    y1 = jnp.dot(xs.reshape((Th + 2) * W, Cin).astype(cdt), w1_ref[...],
                 preferred_element_type=jnp.float32)
    y1 = jnp.maximum(y1 + b1_ref[...], 0.0).reshape(Th + 2, W, P)
    # conv2's padding=1 zero-pads *y1* at the image border -> zero those halo rows.
    row = lax.broadcasted_iota(jnp.int32, (Th + 2, 1, 1), 0)
    pad_row = ((row == 0) & (t == 0)) | ((row == Th + 1) & (t == n_t - 1))
    y1 = jnp.where(pad_row, jnp.zeros_like(y1), y1)

    # ---- stage 2: conv2 (3x3) + bn2 + relu -------------------------------------
    # Build the two W-shifted copies ONCE (reused across the 3 ky taps) and pack the
    # three horizontal taps on the contraction axis -> 3 matmuls with K = 3*P.
    zcol = jnp.zeros((Th + 2, 1, P), jnp.float32)
    y1_m = jnp.concatenate([zcol, y1[:, :W - 1, :]], axis=1)    # y1_m[:, w] = y1[:, w-1]
    y1_p = jnp.concatenate([y1[:, 1:, :], zcol], axis=1)        # y1_p[:, w] = y1[:, w+1]
    slab = jnp.concatenate([y1_m, y1, y1_p], axis=-1).astype(cdt)   # (Th+2, W, 3P)

    acc = jnp.zeros((Th * W, P), jnp.float32)
    for ky in range(3):
        acc = acc + jnp.dot(slab[ky:ky + Th].reshape(Th * W, 3 * P), w2_ref[ky],
                            preferred_element_type=jnp.float32)
    y2 = jnp.maximum(acc + b2_ref[...], 0.0)

    # ---- stage 3: conv3 (1x1) + bn3 + residual add + relu ----------------------
    y3 = jnp.dot(y2.astype(cdt), w3_ref[...], preferred_element_type=jnp.float32)
    y3 = y3 + b3_ref[...] + xv.reshape(Th * W, Cout).astype(jnp.float32)
    o_ref[...] = jnp.maximum(y3, 0.0).reshape(1, Th, W, Cout).astype(o_ref.dtype)


# --------------------------------- wrapper -----------------------------------

def _pick_tile_h(H):
    for th in (32, 16, 8):
        if H % th == 0 and H // th >= 2:
            return th
    return H


def bottleneck_forward(x_nchw, params, eps=1e-5):
    """Fused Bottleneck forward (stride=1, downsample=None), eval-mode BN."""
    # TODO(synk): stride>1 and the optional `downsample` branch are not implemented
    # (the module's default configuration is stride=1, downsample=None).
    N, Cin, H, W = x_nchw.shape
    P = params["w1"].shape[1]
    Cout = params["w3"].shape[1]
    assert Cin == Cout, (
        "identity residual requires inplanes == planes * expansion "
        f"(got inplanes={Cin}, planes*expansion={Cout}); downsample not implemented")

    # TODO(synk): callers that keep activations NHWC end-to-end can drop both transposes.
    x = jnp.transpose(x_nchw, (0, 2, 3, 1))  # NCHW -> NHWC

    def fold(bn):
        s = bn["gamma"] / jnp.sqrt(bn["var"] + eps)
        return s, bn["beta"] - bn["mean"] * s

    s1, b1 = fold(params["bn1"])
    s2, b2 = fold(params["bn2"])
    s3, b3 = fold(params["bn3"])

    cdt = jnp.bfloat16
    # Fold BN scales into the conv weights' output channels; store weights bf16.
    w1 = (params["w1"] * s1[None, :]).astype(cdt)                          # (Cin, P)
    w2 = (params["w2"] * s2[None, None, :]).reshape(3, 3, P, P)            # [ky][kx]
    w2 = w2.reshape(3, 3 * P, P).astype(cdt)                               # (3, 3P, P)
    w3 = (params["w3"] * s3[None, :]).astype(cdt)                          # (P, Cout)

    tile_h = _pick_tile_h(H)
    n_t = H // tile_h

    out = pl.pallas_call(
        _bottleneck_kernel,
        out_shape=jax.ShapeDtypeStruct((N, H, W, Cout), x.dtype),
        grid=(N, n_t),
        in_specs=[
            pl.BlockSpec((1, tile_h, W, Cin), lambda n, t: (n, t, 0, 0)),
            # 1-row halos (block size 1 along H -> block index == row index), clamped at
            # the image border; the kernel zeroes them in y1-space there.
            pl.BlockSpec((1, 1, W, Cin),
                         lambda n, t: (n, jnp.maximum(t * tile_h - 1, 0), 0, 0)),
            pl.BlockSpec((1, 1, W, Cin),
                         lambda n, t: (n, jnp.minimum((t + 1) * tile_h, H - 1), 0, 0)),
            pl.BlockSpec((Cin, P), lambda n, t: (0, 0)),
            pl.BlockSpec((1, P), lambda n, t: (0, 0)),
            pl.BlockSpec((3, 3 * P, P), lambda n, t: (0, 0, 0)),
            pl.BlockSpec((1, P), lambda n, t: (0, 0)),
            pl.BlockSpec((P, Cout), lambda n, t: (0, 0)),
            pl.BlockSpec((1, Cout), lambda n, t: (0, 0)),
        ],
        out_specs=pl.BlockSpec((1, tile_h, W, Cout), lambda n, t: (n, t, 0, 0)),
        compiler_params=pltpu.CompilerParams(
            dimension_semantics=("parallel", "parallel")),
    )(x, x, x, w1, b1.reshape(1, P), w2, b2.reshape(1, P), w3, b3.reshape(1, Cout))

    return jnp.transpose(out, (0, 3, 1, 2))  # NHWC -> NCHW


# --------------------------- params / reference -----------------------------

def init_params(key, inplanes, planes, expansion=4):
    keys = jax.random.split(key, 6)

    def bn_params(k, c):
        k1, k2, k3, k4 = jax.random.split(k, 4)
        return {
            "gamma": jax.random.uniform(k1, (c,), jnp.float32, 0.5, 1.5),
            "beta": jax.random.normal(k2, (c,), jnp.float32) * 0.1,
            "mean": jax.random.normal(k3, (c,), jnp.float32) * 0.1,
            "var": jax.random.uniform(k4, (c,), jnp.float32, 0.5, 1.5),
        }

    out_c = planes * expansion
    return {
        # w1: (Cin, P) ; w2: (9, P, P) [tap = ky*3+kx] ; w3: (P, 4P)
        "w1": jax.random.normal(keys[0], (inplanes, planes), jnp.float32)
        / jnp.sqrt(float(inplanes)),
        "w2": jax.random.normal(keys[1], (9, planes, planes), jnp.float32)
        / jnp.sqrt(float(9 * planes)),
        "w3": jax.random.normal(keys[2], (planes, out_c), jnp.float32)
        / jnp.sqrt(float(planes)),
        "bn1": bn_params(keys[3], planes),
        "bn2": bn_params(keys[4], planes),
        "bn3": bn_params(keys[5], out_c),
    }


def reference_forward(x_nchw, params, eps=1e-5):
    """Pure-JAX (XLA conv) reference, NCHW, eval-mode BN."""

    def bn(y, p):
        scale = p["gamma"] / jnp.sqrt(p["var"] + eps)
        bias = p["beta"] - p["mean"] * scale
        return y * scale[None, :, None, None] + bias[None, :, None, None]

    def conv(y, w_hwio, pad):
        return lax.conv_general_dilated(
            y, w_hwio, window_strides=(1, 1), padding=pad,
            dimension_numbers=("NCHW", "HWIO", "NCHW"))

    _, p = params["w1"].shape
    w1 = params["w1"][None, None]
    w2 = params["w2"].reshape(3, 3, p, p)
    w3 = params["w3"][None, None]

    out = jax.nn.relu(bn(conv(x_nchw, w1, ((0, 0), (0, 0))), params["bn1"]))
    out = jax.nn.relu(bn(conv(out, w2, ((1, 1), (1, 1))), params["bn2"]))
    out = bn(conv(out, w3, ((0, 0), (0, 0))), params["bn3"])
    return jax.nn.relu(out + x_nchw)


# ----------------------------------- main ------------------------------------

if __name__ == "__main__":
    # Lane-dense demo shapes: planes=32 -> inplanes = Cout = 128 channels, 16x16 spatial.
    N, planes, H, W = 2, 32, 16, 16
    inplanes = planes * 4  # identity residual requires inplanes == planes * expansion
    key = jax.random.PRNGKey(0)
    kx, kp = jax.random.split(key)
    x = jax.random.normal(kx, (N, inplanes, H, W), jnp.float32)
    params = init_params(kp, inplanes, planes)

    fwd = jax.jit(bottleneck_forward)
    out = jax.block_until_ready(fwd(x, params))
    assert out.shape == (N, inplanes, H, W)

    ref = jax.block_until_ready(reference_forward(x, params))
    np.testing.assert_allclose(np.asarray(out), np.asarray(ref),
                               rtol=5e-2, atol=5e-2)
    print("KERNEL_OK")
</pallas_src>

<mosaic_0001>
module attributes {stable_mosaic.version = 11 : i64} {
  func.func @_bottleneck_kernel(%arg0: i32, %arg1: i32, %arg2: memref<1x8x16x128xf32, #tpu.memory_space<vmem>>, %arg3: memref<1x1x16x128xf32, #tpu.memory_space<vmem>>, %arg4: memref<1x1x16x128xf32, #tpu.memory_space<vmem>>, %arg5: memref<128x32xbf16, #tpu.memory_space<vmem>>, %arg6: memref<1x32xf32, #tpu.memory_space<vmem>>, %arg7: memref<3x96x32xbf16, #tpu.memory_space<vmem>>, %arg8: memref<1x32xf32, #tpu.memory_space<vmem>>, %arg9: memref<32x128xbf16, #tpu.memory_space<vmem>>, %arg10: memref<1x128xf32, #tpu.memory_space<vmem>>, %arg11: memref<1x8x16x128xf32, #tpu.memory_space<vmem>>) attributes {dimension_semantics = [#tpu.dimension_semantics<parallel>, #tpu.dimension_semantics<parallel>], iteration_bounds = array<i64: 2, 2>, scalar_prefetch = 0 : i64, scratch_operands = 0 : i64, tpu.core_type = #tpu.core_type<tc>, window_params = [{transform_indices = @transform_0, window_bounds = array<i64: 1, 8, 16, 128>}, {transform_indices = @transform_1, window_bounds = array<i64: 1, 1, 16, 128>}, {transform_indices = @transform_2, window_bounds = array<i64: 1, 1, 16, 128>}, {pipeline_mode = #tpu.pipeline_mode<synchronous>, transform_indices = @transform_3, window_bounds = array<i64: 128, 32>}, {pipeline_mode = #tpu.pipeline_mode<synchronous>, transform_indices = @transform_4, window_bounds = array<i64: 1, 32>}, {pipeline_mode = #tpu.pipeline_mode<synchronous>, transform_indices = @transform_5, window_bounds = array<i64: 3, 96, 32>}, {pipeline_mode = #tpu.pipeline_mode<synchronous>, transform_indices = @transform_6, window_bounds = array<i64: 1, 32>}, {pipeline_mode = #tpu.pipeline_mode<synchronous>, transform_indices = @transform_7, window_bounds = array<i64: 32, 128>}, {pipeline_mode = #tpu.pipeline_mode<synchronous>, transform_indices = @transform_8, window_bounds = array<i64: 1, 128>}, {transform_indices = @transform_9, window_bounds = array<i64: 1, 8, 16, 128>}]} {
    %c0 = arith.constant 0 : index
    %c0_0 = arith.constant 0 : index
    %c0_1 = arith.constant 0 : index
    %c0_2 = arith.constant 0 : index
    %0 = vector.load %arg2[%c0, %c0_0, %c0_1, %c0_2] : memref<1x8x16x128xf32, #tpu.memory_space<vmem>>, vector<1x8x16x128xf32>
    %c0_3 = arith.constant 0 : index
    %c0_4 = arith.constant 0 : index
    %c0_5 = arith.constant 0 : index
    %c0_6 = arith.constant 0 : index
    %1 = vector.load %arg3[%c0_3, %c0_4, %c0_5, %c0_6] : memref<1x1x16x128xf32, #tpu.memory_space<vmem>>, vector<1x1x16x128xf32>
    %2 = vector.shape_cast %1 : vector<1x1x16x128xf32> to vector<1x16x128xf32>
    %3 = vector.shape_cast %0 : vector<1x8x16x128xf32> to vector<8x16x128xf32>
    %c0_7 = arith.constant 0 : index
    %c0_8 = arith.constant 0 : index
    %c0_9 = arith.constant 0 : index
    %c0_10 = arith.constant 0 : index
    %4 = vector.load %arg4[%c0_7, %c0_8, %c0_9, %c0_10] : memref<1x1x16x128xf32, #tpu.memory_space<vmem>>, vector<1x1x16x128xf32>
    %5 = vector.shape_cast %4 : vector<1x1x16x128xf32> to vector<1x16x128xf32>
    %6 = tpu.concatenate %2, %3, %5 in 0 : vector<1x16x128xf32>, vector<8x16x128xf32>, vector<1x16x128xf32> -> vector<10x16x128xf32>
    %7 = vector.shape_cast %6 : vector<10x16x128xf32> to vector<160x128xf32>
    %8 = arith.truncf %7 : vector<160x128xf32> to vector<160x128xbf16>
    %c0_11 = arith.constant 0 : index
    %c0_12 = arith.constant 0 : index
    %9 = vector.load %arg5[%c0_11, %c0_12] : memref<128x32xbf16, #tpu.memory_space<vmem>>, vector<128x32xbf16>
    %cst = arith.constant dense<0.000000e+00> : vector<160x32xf32>
    %10 = tpu.matmul %8, %9, %cst {dimension_numbers = #tpu.dot_dimension_numbers<[1], [0], [0], [1], [0, 0, 1, 1], [], []>} : vector<160x128xbf16>, vector<128x32xbf16>, vector<160x32xf32> -> vector<160x32xf32>
    %c0_13 = arith.constant 0 : index
    %c0_14 = arith.constant 0 : index
    %11 = vector.load %arg6[%c0_13, %c0_14] : memref<1x32xf32, #tpu.memory_space<vmem>>, vector<1x32xf32>
    %12 = vector.broadcast %11 : vector<1x32xf32> to vector<160x32xf32>
    %13 = arith.addf %10, %12 : vector<160x32xf32>
    %cst_15 = arith.constant 0.000000e+00 : f32
    %14 = vector.broadcast %cst_15 : f32 to vector<160x32xf32>
    %15 = arith.maximumf %13, %14 : vector<160x32xf32>
    %16 = vector.shape_cast %15 : vector<160x32xf32> to vector<10x16x32xf32>
    %17 = tpu.iota {dimensions = array<i32: 0>} : vector<10x1x1xi32>
    %c0_i32 = arith.constant 0 : i32
    %18 = vector.broadcast %c0_i32 : i32 to vector<10x1x1xi32>
    %19 = arith.cmpi eq, %17, %18 : vector<10x1x1xi32>
    %c0_i32_16 = arith.constant 0 : i32
    %20 = arith.cmpi eq, %arg1, %c0_i32_16 : i32
    %21 = vector.broadcast %20 : i1 to vector<10x1x1xi1>
    %22 = arith.andi %19, %21 : vector<10x1x1xi1>
    %c9_i32 = arith.constant 9 : i32
    %23 = vector.broadcast %c9_i32 : i32 to vector<10x1x1xi32>
    %24 = arith.cmpi eq, %17, %23 : vector<10x1x1xi32>
    %c1_i32 = arith.constant 1 : i32
    %25 = arith.cmpi eq, %arg1, %c1_i32 : i32
    %26 = vector.broadcast %25 : i1 to vector<10x1x1xi1>
    %27 = arith.andi %24, %26 : vector<10x1x1xi1>
    %28 = arith.ori %22, %27 : vector<10x1x1xi1>
    %cst_17 = arith.constant 0.000000e+00 : f32
    %29 = vector.broadcast %cst_17 : f32 to vector<10x16x32xf32>
    %30 = vector.shape_cast %28 : vector<10x1x1xi1> to vector<10x1x1xi1>
    %31 = vector.broadcast %30 : vector<10x1x1xi1> to vector<10x16x32xi1>
    %32 = arith.select %31, %29, %16 : vector<10x16x32xi1>, vector<10x16x32xf32>
    %cst_18 = arith.constant 0.000000e+00 : f32
    %33 = vector.broadcast %cst_18 : f32 to vector<10x1x32xf32>
    %34 = vector.extract_strided_slice %32 {offsets = [0, 0, 0], sizes = [10, 15, 32], strides = [1, 1, 1]} : vector<10x16x32xf32> to vector<10x15x32xf32>
    %35 = tpu.concatenate %33, %34 in 1 : vector<10x1x32xf32>, vector<10x15x32xf32> -> vector<10x16x32xf32>
    %36 = vector.extract_strided_slice %32 {offsets = [0, 1, 0], sizes = [10, 15, 32], strides = [1, 1, 1]} : vector<10x16x32xf32> to vector<10x15x32xf32>
    %37 = tpu.concatenate %36, %33 in 1 : vector<10x15x32xf32>, vector<10x1x32xf32> -> vector<10x16x32xf32>
    %38 = tpu.concatenate %35, %32, %37 in 2 : vector<10x16x32xf32>, vector<10x16x32xf32>, vector<10x16x32xf32> -> vector<10x16x96xf32>
    %39 = arith.truncf %38 : vector<10x16x96xf32> to vector<10x16x96xbf16>
    %cst_19 = arith.constant 0.000000e+00 : f32
    %40 = vector.broadcast %cst_19 : f32 to vector<128x32xf32>
    %41 = vector.extract_strided_slice %39 {offsets = [0, 0, 0], sizes = [8, 16, 96], strides = [1, 1, 1]} : vector<10x16x96xbf16> to vector<8x16x96xbf16>
    %42 = vector.shape_cast %41 : vector<8x16x96xbf16> to vector<128x96xbf16>
    %c0_20 = arith.constant 0 : index
    %c0_21 = arith.constant 0 : index
    %c0_22 = arith.constant 0 : index
    %43 = vector.load %arg7[%c0_20, %c0_21, %c0_22] : memref<3x96x32xbf16, #tpu.memory_space<vmem>>, vector<1x96x32xbf16>
    %44 = vector.shape_cast %43 : vector<1x96x32xbf16> to vector<96x32xbf16>
    %cst_23 = arith.constant dense<0.000000e+00> : vector<128x32xf32>
    %45 = tpu.matmul %42, %44, %cst_23 {dimension_numbers = #tpu.dot_dimension_numbers<[1], [0], [0], [1], [0, 0, 1, 1], [], []>} : vector<128x96xbf16>, vector<96x32xbf16>, vector<128x32xf32> -> vector<128x32xf32>
    %46 = arith.addf %40, %45 : vector<128x32xf32>
    %47 = vector.extract_strided_slice %39 {offsets = [1, 0, 0], sizes = [8, 16, 96], strides = [1, 1, 1]} : vector<10x16x96xbf16> to vector<8x16x96xbf16>
    %48 = vector.shape_cast %47 : vector<8x16x96xbf16> to vector<128x96xbf16>
    %c1 = arith.constant 1 : index
    %c0_24 = arith.constant 0 : index
    %c0_25 = arith.constant 0 : index
    %49 = vector.load %arg7[%c1, %c0_24, %c0_25] : memref<3x96x32xbf16, #tpu.memory_space<vmem>>, vector<1x96x32xbf16>
    %50 = vector.shape_cast %49 : vector<1x96x32xbf16> to vector<96x32xbf16>
    %cst_26 = arith.constant dense<0.000000e+00> : vector<128x32xf32>
    %51 = tpu.matmul %48, %50, %cst_26 {dimension_numbers = #tpu.dot_dimension_numbers<[1], [0], [0], [1], [0, 0, 1, 1], [], []>} : vector<128x96xbf16>, vector<96x32xbf16>, vector<128x32xf32> -> vector<128x32xf32>
    %52 = arith.addf %46, %51 : vector<128x32xf32>
    %53 = vector.extract_strided_slice %39 {offsets = [2, 0, 0], sizes = [8, 16, 96], strides = [1, 1, 1]} : vector<10x16x96xbf16> to vector<8x16x96xbf16>
    %54 = vector.shape_cast %53 : vector<8x16x96xbf16> to vector<128x96xbf16>
    %c2 = arith.constant 2 : index
    %c0_27 = arith.constant 0 : index
    %c0_28 = arith.constant 0 : index
    %55 = vector.load %arg7[%c2, %c0_27, %c0_28] : memref<3x96x32xbf16, #tpu.memory_space<vmem>>, vector<1x96x32xbf16>
    %56 = vector.shape_cast %55 : vector<1x96x32xbf16> to vector<96x32xbf16>
    %cst_29 = arith.constant dense<0.000000e+00> : vector<128x32xf32>
    %57 = tpu.matmul %54, %56, %cst_29 {dimension_numbers = #tpu.dot_dimension_numbers<[1], [0], [0], [1], [0, 0, 1, 1], [], []>} : vector<128x96xbf16>, vector<96x32xbf16>, vector<128x32xf32> -> vector<128x32xf32>
    %58 = arith.addf %52, %57 : vector<128x32xf32>
    %c0_30 = arith.constant 0 : index
    %c0_31 = arith.constant 0 : index
    %59 = vector.load %arg8[%c0_30, %c0_31] : memref<1x32xf32, #tpu.memory_space<vmem>>, vector<1x32xf32>
    %60 = vector.broadcast %59 : vector<1x32xf32> to vector<128x32xf32>
    %61 = arith.addf %58, %60 : vector<128x32xf32>
    %cst_32 = arith.constant 0.000000e+00 : f32
    %62 = vector.broadcast %cst_32 : f32 to vector<128x32xf32>
    %63 = arith.maximumf %61, %62 : vector<128x32xf32>
    %64 = arith.truncf %63 : vector<128x32xf32> to vector<128x32xbf16>
    %c0_33 = arith.constant 0 : index
    %c0_34 = arith.constant 0 : index
    %65 = vector.load %arg9[%c0_33, %c0_34] : memref<32x128xbf16, #tpu.memory_space<vmem>>, vector<32x128xbf16>
    %cst_35 = arith.constant dense<0.000000e+00> : vector<128x128xf32>
    %66 = tpu.matmul %64, %65, %cst_35 {dimension_numbers = #tpu.dot_dimension_numbers<[1], [0], [0], [1], [0, 0, 1, 1], [], []>} : vector<128x32xbf16>, vector<32x128xbf16>, vector<128x128xf32> -> vector<128x128xf32>
    %c0_36 = arith.constant 0 : index
    %c0_37 = arith.constant 0 : index
    %67 = vector.load %arg10[%c0_36, %c0_37] : memref<1x128xf32, #tpu.memory_space<vmem>>, vector<1x128xf32>
    %68 = vector.broadcast %67 : vector<1x128xf32> to vector<128x128xf32>
    %69 = arith.addf %66, %68 : vector<128x128xf32>
    %70 = vector.shape_cast %0 : vector<1x8x16x128xf32> to vector<128x128xf32>
    %71 = arith.addf %69, %70 : vector<128x128xf32>
    %cst_38 = arith.constant 0.000000e+00 : f32
    %72 = vector.broadcast %cst_38 : f32 to vector<128x128xf32>
    %73 = arith.maximumf %71, %72 : vector<128x128xf32>
    %74 = vector.shape_cast %73 : vector<128x128xf32> to vector<1x8x16x128xf32>
    %c0_39 = arith.constant 0 : index
    %c0_40 = arith.constant 0 : index
    %c0_41 = arith.constant 0 : index
    %c0_42 = arith.constant 0 : index
    %75 = vector.load %arg11[%c0_39, %c0_40, %c0_41, %c0_42] : memref<1x8x16x128xf32, #tpu.memory_space<vmem>>, vector<1x8x16x128xf32>
    tpu.vector_store %arg11[%c0_39, %c0_40, %c0_41, %c0_42], %74 {strides = array<i32>} : memref<1x8x16x128xf32, #tpu.memory_space<vmem>>, vector<1x8x16x128xf32>,
    return
  }
  func.func @transform_0(%arg0: i32, %arg1: i32) -> (i32, i32, i32, i32) {
    %c0_i32 = arith.constant 0 : i32
    %c0_i32_0 = arith.constant 0 : i32
    %c0_i32_1 = arith.constant 0 : i32
    return %arg0, %arg1, %c0_i32, %c0_i32_0 : i32, i32, i32, i32
  }
  func.func @transform_1(%arg0: i32, %arg1: i32) -> (i32, i32, i32, i32) {
    %c8_i32 = arith.constant 8 : i32
    %0 = arith.muli %arg1, %c8_i32 : i32
    %c1_i32 = arith.constant 1 : i32
    %1 = arith.subi %0, %c1_i32 : i32
    %c0_i32 = arith.constant 0 : i32
    %2 = arith.maxsi %1, %c0_i32 : i32
    %c0_i32_0 = arith.constant 0 : i32
    %c0_i32_1 = arith.constant 0 : i32
    %c0_i32_2 = arith.constant 0 : i32
    return %arg0, %2, %c0_i32_0, %c0_i32_1 : i32, i32, i32, i32
  }
  func.func @transform_2(%arg0: i32, %arg1: i32) -> (i32, i32, i32, i32) {
    %c1_i32 = arith.constant 1 : i32
    %0 = arith.addi %arg1, %c1_i32 : i32
    %c8_i32 = arith.constant 8 : i32
    %1 = arith.muli %0, %c8_i32 : i32
    %c15_i32 = arith.constant 15 : i32
    %2 = arith.minsi %1, %c15_i32 : i32
    %c0_i32 = arith.constant 0 : i32
    %c0_i32_0 = arith.constant 0 : i32
    %c0_i32_1 = arith.constant 0 : i32
    return %arg0, %2, %c0_i32, %c0_i32_0 : i32, i32, i32, i32
  }
  func.func @transform_3(%arg0: i32, %arg1: i32) -> (i32, i32) {
    %c0_i32 = arith.constant 0 : i32
    %c0_i32_0 = arith.constant 0 : i32
    %c0_i32_1 = arith.constant 0 : i32
    return %c0_i32, %c0_i32_0 : i32, i32
  }
  func.func @transform_4(%arg0: i32, %arg1: i32) -> (i32, i32) {
    %c0_i32 = arith.constant 0 : i32
    %c0_i32_0 = arith.constant 0 : i32
    %c0_i32_1 = arith.constant 0 : i32
    return %c0_i32, %c0_i32_0 : i32, i32
  }
  func.func @transform_5(%arg0: i32, %arg1: i32) -> (i32, i32, i32) {
    %c0_i32 = arith.constant 0 : i32
    %c0_i32_0 = arith.constant 0 : i32
    %c0_i32_1 = arith.constant 0 : i32
    %c0_i32_2 = arith.constant 0 : i32
    return %c0_i32, %c0_i32_0, %c0_i32_1 : i32, i32, i32
  }
  func.func @transform_6(%arg0: i32, %arg1: i32) -> (i32, i32) {
    %c0_i32 = arith.constant 0 : i32
    %c0_i32_0 = arith.constant 0 : i32
    %c0_i32_1 = arith.constant 0 : i32
    return %c0_i32, %c0_i32_0 : i32, i32
  }
  func.func @transform_7(%arg0: i32, %arg1: i32) -> (i32, i32) {
    %c0_i32 = arith.constant 0 : i32
    %c0_i32_0 = arith.constant 0 : i32
    %c0_i32_1 = arith.constant 0 : i32
    return %c0_i32, %c0_i32_0 : i32, i32
  }
  func.func @transform_8(%arg0: i32, %arg1: i32) -> (i32, i32) {
    %c0_i32 = arith.constant 0 : i32
    %c0_i32_0 = arith.constant 0 : i32
    %c0_i32_1 = arith.constant 0 : i32
    return %c0_i32, %c0_i32_0 : i32, i32
  }
  func.func @transform_9(%arg0: i32, %arg1: i32) -> (i32, i32, i32, i32) {
    %c0_i32 = arith.constant 0 : i32
    %c0_i32_0 = arith.constant 0 : i32
    %c0_i32_1 = arith.constant 0 : i32
    return %arg0, %arg1, %c0_i32, %c0_i32_0 : i32, i32, i32, i32
  }
}

</mosaic_0001>

<bundles_post_ra>
// kernel: bottleneck_forward.1
= control target key start
LH: loop header
LB: loop body
LE: loop exit
PB: predicated region body
PF: predicated region fallthrough
CT: control target
= control target key end

     0   :  { %14 = vsyncpa [#allocation3], 0  ;;  %s3404_s0 = inlined_call_operand.vmem [shape: f32[2,16,16,128], index: 0, kind: input, shape index: {}, may-alias: {0,1,2}]   ;;  %s3405_s1 = inlined_call_operand.vmem [shape: f32[2,16,16,128], index: 1, kind: input, shape index: {}, may-alias: {0,1,2}]   ;;  %s3406_s2 = inlined_call_operand.vmem [shape: f32[2,16,16,128], index: 2, kind: input, shape index: {}, may-alias: {0,1,2}]   ;;  %s3407_s3 = inlined_call_operand.vmem [shape: bf16[128,32], index: 3, kind: input, shape index: {}]   ;;  %s3408_s4 = inlined_call_operand.vmem [shape: f32[1,32], index: 4, kind: input, shape index: {}]   ;;  %s3409_s5 = inlined_call_operand.vmem [shape: bf16[3,96,32], index: 5, kind: input, shape index: {}]   ;;  %s3410_s6 = inlined_call_operand.vmem [shape: f32[1,32], index: 6, kind: input, shape index: {}]   ;;  %s3411_s7 = inlined_call_operand.vmem [shape: bf16[32,128], index: 7, kind: input, shape index: {}]   ;;  %s3412_s8 = inlined_call_operand.vmem [shape: f32[1,128], index: 8, kind: input, shape index: {}]   ;;  %s3413_s9 = inlined_call_operand.hbm [shape: f32[2,16,16,128], index: 9, kind: output, shape index: {}]  }
   0x1   :  { %16 = vsyncpa [#allocation3 + $0x1], 0  ;;  %s2697_s30 = smov 0   ;;  %s2699_s10 = smov 0  }
   0x2   :  { %s2701_s11 = smov 0   ;;  %s2703_s12 = smov 0  }
   0x3   :  { %s2705_s13 = smov 0   ;;  %s2707_s14 = smov 0  }
   0x4   :  { %s2709_s15 = smov 0   ;;  %s2711_s16 = smov 0  }
   0x5 LB: > { %3421 = sst [smem:[#allocation5_spill]] %s2612_s30  ;;  %s1937_s17 = sadd.s32 4294967295, %s2640_s16   ;;  %s2640_s16 = sphi %s2711_s16, %s22_s16   ;;  %s2636_s15 = sphi %s2709_s15, %s3443_s15   ;;  %s2632_s14 = sphi %s2707_s14, %s3442_s14   ;;  %s2628_s13 = sphi %s2705_s13, %s3441_s13   ;;  %s2624_s12 = sphi %s2703_s12, %s3440_s12   ;;  %s2620_s11 = sphi %s2701_s11, %s3439_s11   ;;  %s2616_s10 = sphi %s2699_s10, %s3445_s10   ;;  %s2612_s30 = sphi %s2697_s30, %s3444_s30  }
   0x6   : > { %3422 = sst [smem:[#allocation6_spill]] %s2620_s11  ;;  %s1938_s18 = sadd.s32 4294967294, %s2640_s16  }
   0x7   : > { %3423 = sst [smem:[#allocation7_spill]] %s2632_s14  ;;  %s31_s19 = sadd.s32 1, %s2632_s14 }
   0x8   : > { %3424 = sst [smem:[#allocation8_spill]] %s2636_s15  ;;  %p32_p0 = scmp.ge.s32.totalorder %s31_s19, 2 }
   0x9   : > { %s34_s20 = sadd.s32 1, %s2636_s15  ;;  %p279_p1 = scmp.ne.s32.totalorder %s2620_s11, %s2616_s10 }
   0xa   : > { %p280_p2 = scmp.eq.s32.totalorder %s1937_s17, 3  ;;  %s3447_s19 = smov (%p32_p0, %s31_s19), 0 }
   0xb   : > { %3425 = sst [smem:[#allocation9_spill]] %s3447_s19  ;;  %s3449_s20 = smov (!%p32_p0, %s34_s20), %s2636_s15 }
   0xc   : > { %s265_s21 = ssub.s32 %s2632_s14, %s3447_s19  ;;  %p2748_p3 = por %p280_p2, %p279_p1 }
   0xd   : > { %p36_p4 = scmp.ge.s32.totalorder %s3449_s20, 2  ;;  %p285_p5 = scmp.ne.s32.totalorder %s2616_s10, %s2612_s30 }
   0xe   : > { %p286_p6 = scmp.eq.s32.totalorder %s1938_s18, 3  ;;  %p1947_p7 = scmp.ge.s32.totalorder %s2640_s16, 1 }
   0xf   : > { %s3451_s20 = smov (%p36_p4, %s3449_s20), 0  ;;  %p376_p9 = scmp.lt.s32.totalorder %s2640_s16, 5 }
  0x10   : > { %3427 = sst [smem:[#allocation10_spill]] %s3451_s20  ;;  %p2757_p8 = por %p286_p6, %p285_p5 }
  0x11   : > { %s264_s24 = ssub.s32 %s2636_s15, %s3451_s20  ;;  %s269_s25 = sadd.s32 1, %s2620_s11 }
  0x12   : > { %s3428_s23 = scalar_select %p2757_p8, 1, 0 }
  0x13   : > { %s266_s26 = sor.u32 %s265_s21, %s264_s24  ;;  %p377_p10 = pnand %p1947_p7, %p376_p9 }
  0x14   : > { %3429 = sst [smem:[#allocation11_spill]] %s3428_s23  ;;  %p267_p11 = scmp.eq.s32.totalorder %s266_s26, 0  ;;  %v2502_v0 = vld [vmem:[%s3407_s3] sm:$0xff] (!%p377_p10)   ;;  %v2503_v1 = vld [vmem:[%s3407_s3 + $0x8] sm:$0xff] (!%p377_p10)   ;;  %v2504_v2 = vld [vmem:[%s3407_s3 + $0x10] sm:$0xff] (!%p377_p10)   ;;  %vm837_vm1 = vcmask (!%p377_p10), 1046528  }
  0x15   : > { %380 = sbr.rel (%p377_p10) target bundleno = 956 (0x3bc), region = 56  ;;  %s2772_s17 = sshll.u32 (!%p377_p10), %s2624_s12, 3  ;;  %2143 = vmatprep.subr.bf16.mxu0 (!%p377_p10), %v2502_v0  ;;  %v2505_v3 = vld [vmem:[%s3407_s3 + $0x18] sm:$0xff] (!%p377_p10)   ;;  %v2506_v4 = vld [vmem:[%s3407_s3 + $0x20] sm:$0xff] (!%p377_p10)   ;;  %v2507_v5 = vld [vmem:[%s3407_s3 + $0x28] sm:$0xff] (!%p377_p10)   ;;  %vm776_vm2 = vcmask (!%p377_p10), 1040384  }
  0x16   : > { %s2766_s27 = scalar_select %p267_p11, %s2620_s11, %s269_s25  }
  0x17   : > { %p444_p12 = scmp.lt.s32.totalorder (!%p377_p10), %s2628_s13, 1  ;;  %p446_p13 = scmp.lt.s32.totalorder (!%p377_p10), %s2772_s17, 15  ;;  %2144 = vmatpush3.bf16.msra.mxu0 (!%p377_p10), %v2502_v0  ;;  %v2508_v9 = vld [vmem:[%s3407_s3 + $0x30] sm:$0xff] (!%p377_p10)   ;;  %v2509_v10 = vld [vmem:[%s3407_s3 + $0x38] sm:$0xff] (!%p377_p10)   ;;  %v2851_v40 = vld [vmem:[%s3408_s4] ss:$0 sm:$0xff] (!%p377_p10) }
  0x18   : > { %3430 = sst [smem:[#allocation12_spill]] %s2766_s27  ;;  %2145 = vmatprep.subr.bf16.mxu0 (!%p377_p10), %v2503_v1  ;;  %s1954_s28 = sadd.s32 (!%p377_p10), 4294967295, %s2772_s17  ;;  %v2510_v38 = vld [vmem:[%s3409_s5 + $0x30] sm:$0xff] (!%p377_p10)   ;;  %v2511_v39 = vld [vmem:[%s3409_s5 + $0x38] sm:$0xff] (!%p377_p10)   ;;  %v2512_v54 = vld [vmem:[%s3409_s5 + $0x40] sm:$0xff] (!%p377_p10)   ;;  %vm1018_vm4 = vcmask (!%p377_p10), 261120  }
  0x19   : > { %p456_p0 = scmp.gt.s32.totalorder (!%p377_p10), %s1954_s28, 0  ;;  %p1955_p1 = scmp.lt.s32.totalorder (!%p377_p10), %s1954_s28, 15  ;;  %2283 = vmatprep.subr.bf16.mxu1 (!%p377_p10), %v2510_v38  ;;  %v2513_v58 = vld [vmem:[%s3409_s5 + $0x48] sm:$0xff] (!%p377_p10)   ;;  %vm1039_vm5 = vcmask (!%p377_p10), 523264   ;;  %vm1131_vm6 = vcmask (!%p377_p10), 785408  }
  0x1a   : > { %2289 = vmatpush3.bf16.msra.mxu1 (!%p377_p10), %v2510_v38  ;;  %p724_p4 = scmp.eq.s32.totalorder (!%p377_p10), %s2624_s12, 0  ;;  %p728_p5 = scmp.eq.s32.totalorder (!%p377_p10), %s2624_s12, 1 }
  0x1b   : > { %2146 = vmatpush3.bf16.msra.mxu0 (!%p377_p10), %v2503_v1  ;;  %2284 = vmatprep.subr.bf16.mxu1 (!%p377_p10), %v2511_v39  ;;  %s2643_s21 = smov (!%p377_p10), 64  }
  0x1c   : > { %s445_s25 = scalar_select %p444_p12, %s2628_s13, 1  ;;  %2147 = vmatprep.subr.bf16.mxu0 %v2504_v2 }
  0x1d   : > { %s447_s26 = scalar_select %p446_p13, %s2772_s17, 15 }
  0x1e   : > { %s3453_s28 = smov (!%p456_p0, %s1954_s28), 0  ;;  %s2788_s20 = sshll.u32 %s445_s25, 5  ;;  %2290 = vmatpush3.bf16.msra.mxu1 %v2511_v39 }
  0x1f   : > { %2148 = vmatpush3.bf16.msra.mxu0 %v2504_v2  ;;  %s1950_s18 = sshll.u32 %s447_s26, 1  ;;  %s3455_s28 = smov (!%p1955_p1, %s3453_s28), 15  ;;  %2285 = vmatprep.subr.bf16.mxu1 %v2512_v54 }
  0x20   : > { %2149 = vmatprep.subr.bf16.mxu0 %v2505_v3  ;;  %s1960_s15 = sshll.u32 %s3455_s28, 1  ;;  %s450_s14 = sadd.s32 %s2788_s20, %s1950_s18 }
  0x21   : > { %s464_s29 = sadd.s32 %s1960_s15, %s2788_s20  ;;  %s1952_s30 = sshll.u32 %s450_s14, 3 }
  0x22   : > { %s1962_s26 = sshll.u32 %s464_s29, 3  ;;  %s2807_s18 = scalar_lea.vmem %s3404_s0, %s1952_s30  ;;  %2291 = vmatpush3.bf16.msra.mxu1 %v2512_v54 }
  0x23   : > { %2150 = vmatpush3.bf16.msra.mxu0 %v2505_v3  ;;  %s466_s23 = scalar_lea.vmem %s3405_s1, %s1962_s26  ;;  %v490_v11 = vld [vmem:[%s2807_s18] sm:$0xff]  ;;  %v491_v12 = vld [vmem:[%s2807_s18 + $0x8] sm:$0xff]  ;;  %v492_v13 = vld [vmem:[%s2807_s18 + $0x10] sm:$0xff]  ;;  %s2071_s30 = sadd.s32 8, %s2772_s17  ;;  %2286 = vmatprep.subr.bf16.mxu1 %v2513_v58 }
  0x24   : > { %2151 = vmatprep.subr.bf16.mxu0 %v2506_v4  ;;  %v506_v6 = vld [vmem:[%s466_s23] sm:$0xff]  ;;  %v507_v7 = vld [vmem:[%s466_s23 + $0x8] sm:$0xff]  ;;  %v493_v14 = vld [vmem:[%s2807_s18 + $0x18] sm:$0xff]  ;;  %v511_v15 = vpack.c.bf16 %v491_v12, %v490_v11  ;;  %p2819_p2 = scmp.lt.s32.totalorder %s2071_s30, 15  ;;  %s2642_s26 = smov 32  }
  0x25   : > { %v510_v8 = vpack.c.bf16 %v507_v7, %v506_v6  ;;  %v512_v16 = vpack.c.bf16 %v493_v14, %v492_v13  ;;  %v494_v17 = vld [vmem:[%s2807_s18 + $0x20] sm:$0xff]  ;;  %v495_v18 = vld [vmem:[%s2807_s18 + $0x28] sm:$0xff]  ;;  %v496_v19 = vld [vmem:[%s2807_s18 + $0x30] sm:$0xff]  ;;  %s725_s27 = scalar_select %p724_p4, 1, 0 }
  0x26   : > { %v497_v20 = vld [vmem:[%s2807_s18 + $0x38] sm:$0xff]  ;;  %v513_v21 = vpack.c.bf16 %v495_v18, %v494_v17  ;;  %s3457_s30 = smov (!%p2819_p2, %s2071_s30), 15  ;;  %v498_v23 = vld [vmem:[%s2807_s18 + $0x40] sm:$0xff]  ;;  %v499_v24 = vld [vmem:[%s2807_s18 + $0x48] sm:$0xff]  ;;  %2292 = vmatpush3.bf16.msra.mxu1 %v2513_v58  ;;  %s440_s15 = sand.u32 1, %s2616_s10  }
  0x27   : > { %2152 = vmatpush3.bf16.msra.mxu0 %v2506_v4  ;;  %2159 = vmatprep.mubr.bf16.mxu0 %v510_v8  ;;  %v514_v22 = vpack.c.bf16 %v497_v20, %v496_v19  ;;  %s3459_s30 = smov (!%p2819_p2, %s3457_s30), 15  ;;  %v500_v25 = vld [vmem:[%s2807_s18 + $0x50] sm:$0xff]  ;;  %v501_v26 = vld [vmem:[%s2807_s18 + $0x58] sm:$0xff]  ;;  %v515_v27 = vpack.c.bf16 %v499_v24, %v498_v23  ;;  %v502_v29 = vld [vmem:[%s2807_s18 + $0x60] sm:$0xff]  ;;  %v726_v42 = vstv %s725_s27  ;;  %s1948_s14 = sshll.u32 %s440_s15, 7 }
  0x28   : > { %2153 = vmatprep.subr.bf16.mxu0 %v2507_v5  ;;  %v516_v28 = vpack.c.bf16 %v501_v26, %v500_v25  ;;  %s1967_s17 = sshll.u32 %s3459_s30, 1  ;;  %v503_v30 = vld [vmem:[%s2807_s18 + $0x68] sm:$0xff]  ;;  %v504_v31 = vld [vmem:[%s2807_s18 + $0x70] sm:$0xff]  ;;  %v505_v32 = vld [vmem:[%s2807_s18 + $0x78] sm:$0xff]  ;;  %vm2857_vm0 = vcmp.eq.s32.totalorder %v726_v42, 1  ;;  %s3298_s30 = scalar_lea.vmem [#allocation2], %s1948_s14 }
  0x29   : > { %s481_s24 = sadd.s32 %s1967_s17, %s2788_s20  ;;  %v517_v33 = vpack.c.bf16 %v503_v30, %v502_v29  ;;  %v518_v34 = vpack.c.bf16 %v505_v32, %v504_v31  ;;  %v2515_v42 = vld [vmem:[%s3409_s5 + $0x58] sm:$0xff]   ;;  %s2072_s23 = sshll.u32 %s2624_s12, 4 }
  0x2a   : > { %s1969_s29 = sshll.u32 %s481_s24, 3  ;;  %s2060_s17 = sshll.u32 %s2628_s13, 5 }
  0x2b   : > { %2154 = vmatpush3.bf16.msra.mxu0 %v2507_v5  ;;  %s483_s25 = scalar_lea.vmem %s3406_s2, %s1969_s29  ;;  %s1807_s24 = sadd.s32 %s2072_s23, %s2060_s17 }
  0x2c   : > { %2155 = vmatprep.subr.bf16.mxu0 %v2508_v9  ;;  %v508_v35 = vld [vmem:[%s483_s25] sm:$0xff]  ;;  %v509_v36 = vld [vmem:[%s483_s25 + $0x8] sm:$0xff]  ;;  %s2950_s28 = scalar_select %p728_p5, 1, 0 }
  0x2d   : > { %v519_v37 = vpack.c.bf16 %v509_v36, %v508_v35  ;;  %s2061_s12 = sshll.u32 %s1807_s24, 7  ;;  %s1810_s13 = sshll.u32 %s3298_s30, 4  ;;  %s3345_s13 = int_to_ptr.vmem [resolvable:$true] %s1810_s13 }
  0x2e   : > { %s3352_s25 = scalar_lea.sflag [#allocation3], %s440_s15  ;;  %s2644_s20 = smov [#allocation2]  }
  0x2f   : > { %2156 = vmatpush3.bf16.msra.mxu0 %v2508_v9 }
  0x30   : > { %2157 = vmatprep.subr.bf16.mxu0 %v2509_v10 }
  0x33   : > { %2158 = vmatpush3.bf16.msra.mxu0 %v2509_v10 }
  0x34   : > { %2179 = vmatprep.subr.bf16.mxu0 %v2510_v38 }
  0x36   : > { %2160 = vmatmul.mubr.bf16.vlgmr.msra.gmra.mrb[0].mxu0 %v511_v15 }
  0x37   : > { %2163 = vmatprep.mubr.bf16.mxu0 %v512_v16  ;;  %2180 = vmatpush3.bf16.msra.mxu0 %v2510_v38 }
  0x38   : > { %2181 = vmatprep.subr.bf16.mxu0 %v2511_v39 }
  0x3b   : > { %2182 = vmatpush3.bf16.msra.mxu0 %v2511_v39 }
  0x3c   : > { %2183 = vmatprep.subr.bf16.mxu0 %v2512_v54 }
  0x3e   : > { %2164 = vmatmul.mubr.bf16.gmra.mrb[4].mxu0 %v513_v21 }
  0x3f   : > { %2167 = vmatprep.mubr.bf16.mxu0 %v514_v22  ;;  %2184 = vmatpush3.bf16.msra.mxu0 %v2512_v54  ;;  %v2514_v22 = vld [vmem:[%s3409_s5 + $0x50] sm:$0xff]  }
  0x40   : > { %2185 = vmatprep.subr.bf16.mxu0 %v2513_v58  ;;  %2287 = vmatprep.subr.bf16.mxu1 %v2514_v22 }
  0x41   : > { %2293 = vmatpush3.bf16.msra.mxu1 %v2514_v22 }
  0x42   : > { %2288 = vmatprep.subr.bf16.mxu1 %v2515_v42 }
  0x43   : > { %2186 = vmatpush3.bf16.msra.mxu0 %v2513_v58 }
  0x44   : > { %2187 = vmatprep.subr.bf16.mxu0 %v2514_v22 }
  0x45   : > { %2294 = vmatpush3.bf16.msra.mxu1 %v2515_v42 }
  0x46   : > { %2168 = vmatmul.mubr.bf16.gmra.mrb[8].mxu0 %v515_v27 }
  0x47   : > { %2171 = vmatprep.mubr.bf16.mxu0 %v516_v28  ;;  %2188 = vmatpush3.bf16.msra.mxu0 %v2514_v22 }
  0x48   : > { %2189 = vmatprep.subr.bf16.mxu0 %v2515_v42 }
  0x4b   : > { %2190 = vmatpush3.bf16.msra.mxu0 %v2515_v42 }
  0x4e   : > { %2172 = vmatmul.mubr.bf16.gmra.mrb[12].mxu0 %v517_v33 }
  0x4f   : > { %2175 = vmatprep.mubr.bf16.mxu0 %v518_v34 }
  0x56   : > { %2176 = vmatmul.mubr.bf16.gmra.mrb[16].mxu0 %v519_v37 }
 0x109   : > { %v2161_v41 = vpop.f32.mrb[0].mxu0 }
 0x10a   : > { %v634_v43 = vadd.f32 %v2161_v41, %v2851_v40  ;;  %v625_v44 = vpop.f32.mrb[1].mxu0 }
 0x10b   : > { %v626_v45 = vadd.f32 %v2851_v40, %v625_v44  ;;  %v2162_v46 = vpop.f32.mrb[2].mxu0 }
 0x10c   : > { %v2855_v47 = vmax.f32 %v634_v43, 0.0  ;;  %v637_v49 = vadd.f32 %v2162_v46, %v2851_v40  ;;  %v628_v50 = vpop.f32.mrb[3].mxu0 }
 0x10d   : > { %v704_v51 = vmax.f32 %v626_v45, 0.0  ;;  %v629_v52 = vadd.f32 %v2851_v40, %v628_v50 }
 0x10e   : > { %v2863_v53 = vmax.f32 %v637_v49, 0.0  ;;  %v841_v57 = vrot.slane %v2855_v47, 1  ;;  %v780_v19 = vrot.slane %v2855_v47, 7 }
 0x10f   : > { %v2870_v55 = vsel %vm2857_vm0, 0.0, %v704_v51  ;;  %v705_v56 = vmax.f32 %v629_v52, 0.0 }
 0x110   : > { %v777_v59 = vrot.slane %v2870_v55, 7  ;;  %v842_v60 = vrot.slane %v2863_v53, 1  ;;  %v2467_v63 = vpack.i.bf16 %v2863_v53, %v2855_v47  ;;  %v838_v0 = vrot.slane %v2870_v55, 1 }
 0x111   : > { %v2880_v61 = vsel %vm2857_vm0, 0.0, %v705_v56  ;;  %v2165_v62 = vpop.f32.mrb[4].mxu0  ;;  %v781_v20 = vrot.slane %v2863_v53, 7 }
 0x112   : > { %v778_v1 = vrot.slane %v2880_v61, 7  ;;  %v839_v2 = vrot.slane %v2880_v61, 1  ;;  %v650_v3 = vadd.f32 %v2165_v62, %v2851_v40  ;;  %v641_v4 = vpop.f32.mrb[5].mxu0  ;;  %v2447_v7 = vpack.i.bf16 %v2880_v61, %v2870_v55 }
 0x113   : > { %v642_v5 = vadd.f32 %v2851_v40, %v641_v4  ;;  %v2166_v6 = vpop.f32.mrb[6].mxu0  ;;  %v2892_v8 = vsel %vm837_vm1, %v841_v57, %v842_v60  ;;  %v2895_v9 = vsel %vm837_vm1, %v842_v60, 0.0  ;;  %v2966_v54 = vsel %vm776_vm2, %v780_v19, %v781_v20 }
 0x114   : > { %v2897_v10 = vmax.f32 %v650_v3, 0.0  ;;  %v653_v11 = vadd.f32 %v2166_v6, %v2851_v40  ;;  %v644_v12 = vpop.f32.mrb[7].mxu0  ;;  %v2901_v13 = vsel %vm837_vm1, %v838_v0, %v839_v2  ;;  %v2904_v14 = vsel %vm837_vm1, %v839_v2, 0.0  ;;  %v2983_v3 = vld [vmem:[%s3409_s5] sm:$0xff]  }
 0x115   : > { %v2906_v15 = vmax.f32 %v642_v5, 0.0  ;;  %v645_v16 = vadd.f32 %v2851_v40, %v644_v12  ;;  %v2472_v17 = vpack.i.bf16 %v2904_v14, %v2901_v13  ;;  %v2477_v18 = vpack.i.bf16 %v2895_v9, %v2892_v8  ;;  %2207 = vmatprep.subr.bf16.mxu1 %v2983_v3 }
 0x116   : > { %v711_v21 = vmax.f32 %v653_v11, 0.0  ;;  %v786_v23 = vrot.slane %v2897_v10, 7  ;;  %v847_v24 = vrot.slane %v2897_v10, 1  ;;  %v2926_v26 = vsel %vm776_vm2, %v777_v59, %v778_v1 }
 0x117   : > { %v2920_v25 = vmax.f32 %v645_v16, 0.0  ;;  %v783_v27 = vrot.slane %v2906_v15, 7  ;;  %v844_v31 = vrot.slane %v2906_v15, 1  ;;  %v730_v2 = vstv %s2950_s28  ;;  %s2550_s28 = sshll.u32 %s2644_s20, 4  ;;  %s2551_s28 = int_to_ptr.vmem [resolvable:$false] %s2550_s28 }
 0x118   : > { %v787_v28 = vrot.slane %v711_v21, 7  ;;  %v2402_v29 = vpack.i.bf16 %v711_v21, %v2897_v10  ;;  %v848_v30 = vrot.slane %v711_v21, 1  ;;  %vm3017_vm3 = vcmp.eq.s32.totalorder %v730_v2, 1  ;;  %p2553_p10 = scmp.lt.s32.totalorder %s3345_s13, %s2551_s28 }
 0x119   : > { %v784_v32 = vrot.slane %v2920_v25, 7  ;;  %v845_v33 = vrot.slane %v2920_v25, 1  ;;  %v2169_v34 = vpop.f32.mrb[8].mxu0  ;;  %v2482_v35 = vpack.i.bf16 %v2920_v25, %v2906_v15  ;;  %v830_v8 = vsel %vm776_vm2, 0.0, %v786_v23 }
 0x11a   : > { %v666_v36 = vadd.f32 %v2169_v34, %v2851_v40  ;;  %2403 = vrot.lane.b32.xlu0 %v2402_v29, %s2642_s26  ;;  %v657_v37 = vpop.f32.mrb[9].mxu0  ;;  %v849_v38 = vsel %vm837_vm1, %v847_v24, %v848_v30  ;;  %v881_v39 = vsel %vm837_vm1, %v848_v30, 0.0  ;;  %v2942_v41 = vsel %vm776_vm2, %v786_v23, %v787_v28 }
 0x11b   : > { %v658_v43 = vadd.f32 %v2851_v40, %v657_v37  ;;  %v2170_v44 = vpop.f32.mrb[10].mxu0  ;;  %v2407_v45 = vpack.i.bf16 %v881_v39, %v849_v38  ;;  %v2953_v46 = vsel %vm837_vm1, %v844_v31, %v845_v33  ;;  %v2956_v48 = vsel %vm837_vm1, %v845_v33, 0.0 }
 0x11c   : > { %v2958_v49 = vmax.f32 %v666_v36, 0.0  ;;  %v669_v50 = vadd.f32 %v2170_v44, %v2851_v40  ;;  %v660_v51 = vpop.f32.mrb[11].mxu0  ;;  %v2487_v52 = vpack.i.bf16 %v2956_v48, %v2953_v46  ;;  %v2975_v58 = vsel %vm776_vm2, %v783_v27, %v784_v32 }
 0x11d   : > { %v2968_v56 = vmax.f32 %v658_v43, 0.0  ;;  %v661_v57 = vadd.f32 %v2851_v40, %v660_v51  ;;  %2408 = vrot.lane.b32.xlu1 %v2407_v45, %s2643_s21 }
 0x11e   : > { %v715_v60 = vmax.f32 %v669_v50, 0.0  ;;  %v792_v62 = vrot.slane %v2958_v49, 7  ;;  %v853_v0 = vrot.slane %v2958_v49, 1 }
 0x11f   : > { %v713_v1 = vmax.f32 %v661_v57, 0.0  ;;  %v789_v4 = vrot.slane %v2968_v56, 7  ;;  %v850_v12 = vrot.slane %v2968_v56, 1 }
 0x120   : > { %v793_v5 = vrot.slane %v715_v60, 7  ;;  %v854_v6 = vrot.slane %v715_v60, 1  ;;  %v2417_v11 = vpack.i.bf16 %v715_v60, %v2958_v49 }
 0x121   : > { %v790_v16 = vrot.slane %v713_v1, 7  ;;  %v851_v20 = vrot.slane %v713_v1, 1  ;;  %v2173_v21 = vpop.f32.mrb[12].mxu0  ;;  %v2412_v22 = vpack.i.bf16 %v713_v1, %v2968_v56  ;;  %v2517_v56 = vld [vmem:[%s3409_s5 + $0x8] sm:$0xff]  }
 0x122   : > { %v682_v24 = vadd.f32 %v2173_v21, %v2851_v40  ;;  %v673_v28 = vpop.f32.mrb[13].mxu0  ;;  %v855_v29 = vsel %vm837_vm1, %v853_v0, %v854_v6  ;;  %v883_v30 = vsel %vm837_vm1, %v854_v6, 0.0  ;;  %v2996_v31 = vsel %vm776_vm2, %v792_v62, %v793_v5 }
 0x123   : > { %v674_v32 = vadd.f32 %v2851_v40, %v673_v28  ;;  %v2174_v33 = vpop.f32.mrb[14].mxu0  ;;  %2413 = vrot.lane.b32.xlu0 %v2412_v22, %s2642_s26  ;;  %v852_v34 = vsel %vm837_vm1, %v850_v12, %v851_v20  ;;  %v882_v36 = vsel %vm837_vm1, %v851_v20, 0.0  ;;  %v2422_v37 = vpack.i.bf16 %v883_v30, %v855_v29 }
 0x124   : > { %v3002_v38 = vmax.f32 %v682_v24, 0.0  ;;  %v685_v39 = vadd.f32 %v2174_v33, %v2851_v40  ;;  %v676_v42 = vpop.f32.mrb[15].mxu0  ;;  %v2427_v43 = vpack.i.bf16 %v882_v36, %v852_v34  ;;  %v3008_v44 = vsel %vm776_vm2, %v789_v4, %v790_v16 }
 0x125   : > { %v3010_v45 = vmax.f32 %v674_v32, 0.0  ;;  %v677_v50 = vadd.f32 %v2851_v40, %v676_v42 }
 0x126   : > { %v719_v51 = vmax.f32 %v685_v39, 0.0  ;;  %2428 = vrot.lane.b32.xlu1 %v2427_v43, %s2643_s21  ;;  %v798_v57 = vrot.slane %v3002_v38, 7  ;;  %v859_v60 = vrot.slane %v3002_v38, 1 }
 0x127   : > { %v717_v0 = vmax.f32 %v677_v50, 0.0  ;;  %2418 = vrot.lane.b32.xlu0 %v2417_v11, %s2642_s26  ;;  %v795_v5 = vrot.slane %v3010_v45, 7  ;;  %v856_v20 = vrot.slane %v3010_v45, 1 }
 0x128   : > { %v799_v6 = vrot.slane %v719_v51, 7  ;;  %v860_v12 = vrot.slane %v719_v51, 1  ;;  %v2432_v16 = vpack.i.bf16 %v719_v51, %v3002_v38 }
 0x129   : > { %v796_v21 = vrot.slane %v717_v0, 7  ;;  %v857_v22 = vrot.slane %v717_v0, 1  ;;  %v2177_v24 = vpop.f32.mrb[16].mxu0  ;;  %v2437_v28 = vpack.i.bf16 %v717_v0, %v3010_v45 }
 0x12a   : > { %v698_v29 = vadd.f32 %v2177_v24, %v2851_v40  ;;  %v689_v11 = vpop.f32.mrb[17].mxu0  ;;  %v861_v2 = vsel %vm837_vm1, %v859_v60, %v860_v12  ;;  %v885_v30 = vsel %vm837_vm1, %v860_v12, 0.0  ;;  %v3031_v32 = vsel %vm776_vm2, %v798_v57, %v799_v6 }
 0x12b   : > { %v690_v33 = vadd.f32 %v2851_v40, %v689_v11  ;;  %v2178_v34 = vpop.f32.mrb[18].mxu0  ;;  %2423 = vrot.lane.b32.xlu0 %v2422_v37, %s2643_s21  ;;  %2438 = vrot.lane.b32.xlu1 %v2437_v28, %s2642_s26  ;;  %v858_v36 = vsel %vm837_vm1, %v856_v20, %v857_v22  ;;  %v884_v39 = vsel %vm837_vm1, %v857_v22, 0.0  ;;  %v2442_v42 = vpack.i.bf16 %v885_v30, %v861_v2 }
 0x12c   : > { %v722_v43 = vmax.f32 %v698_v29, 0.0  ;;  %v701_v50 = vadd.f32 %v2178_v34, %v2851_v40  ;;  %v692_v51 = vpop.f32.mrb[19].mxu0  ;;  %v2452_v60 = vpack.i.bf16 %v884_v39, %v858_v36  ;;  %v3042_v0 = vsel %vm776_vm2, %v795_v5, %v796_v21 }
 0x12d   : > { %v3044_v6 = vmax.f32 %v690_v33, 0.0  ;;  %v693_v37 = vadd.f32 %v2851_v40, %v692_v51 }
 0x12e   : > { %v754_v12 = vsel %vm3017_vm3, 0.0, %v722_v43  ;;  %v723_v20 = vmax.f32 %v701_v50, 0.0 }
 0x12f   : > { %v804_v22 = vrot.slane %v754_v12, 7  ;;  %2433 = vrot.lane.b32.xlu0 %v2432_v16, %s2642_s26  ;;  %2453 = vrot.lane.b32.xlu1 %v2452_v60, %s2643_s21  ;;  %v865_v24 = vrot.slane %v754_v12, 1  ;;  %v801_v28 = vrot.slane %v3044_v6, 7  ;;  %v721_v29 = vmax.f32 %v693_v37, 0.0 }
 0x130   : > { %v755_v21 = vsel %vm3017_vm3, 0.0, %v723_v20  ;;  %v862_v11 = vrot.slane %v3044_v6, 1 }
 0x131   : > { %v805_v2 = vrot.slane %v755_v21, 7  ;;  %v866_v40 = vrot.slane %v755_v21, 1  ;;  %v2492_v30 = vpack.i.bf16 %v755_v21, %v754_v12  ;;  %v802_v33 = vrot.slane %v721_v29, 7 }
 0x132   : > { %v863_v34 = vrot.slane %v721_v29, 1  ;;  %v2457_v36 = vpack.i.bf16 %v721_v29, %v3044_v6  ;;  %v3057_v16 = vsel %vm776_vm2, 0.0, %v804_v22 }
 0x133   : > { %2443 = vrot.lane.b32.xlu0 %v2442_v42, %s2643_s21  ;;  %v867_v39 = vsel %vm837_vm1, %v865_v24, %v866_v40  ;;  %v887_v1 = vsel %vm837_vm1, %v866_v40, 0.0  ;;  %v3063_v43 = vsel %vm776_vm2, %v804_v22, %v805_v2  ;;  %v3071_v37 = vsel %vm776_vm2, %v801_v28, %v802_v33 }
 0x134   : > { %2458 = vrot.lane.b32.xlu1 %v2457_v36, %s2642_s26  ;;  %v864_v50 = vsel %vm837_vm1, %v862_v11, %v863_v34  ;;  %v886_v51 = vsel %vm837_vm1, %v863_v34, 0.0  ;;  %v2497_v60 = vpack.i.bf16 %v887_v1, %v867_v39  ;;  %v832_v33 = vsel %vm776_vm2, 0.0, %v792_v62  ;;  %v2518_v62 = vld [vmem:[%s3409_s5 + $0x10] sm:$0xff]  }
 0x135   : > { %v2462_v42 = vpack.i.bf16 %v886_v51, %v864_v50 }
 0x137   : > { %2448 = vrot.lane.b32.xlu0 %v2447_v7, %s2642_s26 }
 0x138   : > { %2463 = vrot.lane.b32.xlu1 %v2462_v42, %s2643_s21 }
 0x13b   : > { %2473 = vrot.lane.b32.xlu0 %v2472_v17, %s2643_s21 }
 0x13c   : > { %2468 = vrot.lane.b32.xlu1 %v2467_v63, %s2642_s26 }
 0x13f   : > { %2483 = vrot.lane.b32.xlu0 %v2482_v35, %s2642_s26 }
 0x140   : > { %2478 = vrot.lane.b32.xlu1 %v2477_v18, %s2643_s21 }
 0x143   : > { %2493 = vrot.lane.b32.xlu0 %v2492_v30, %s2642_s26  ;;  %s3343_s26 = scalar_lea.hbm %s3413_s9, %s2061_s12 }
 0x144   : > { %2488 = vrot.lane.b32.xlu1 %v2487_v52, %s2643_s21  ;;  %v831_v52 = vsel %vm776_vm2, 0.0, %v789_v4 }
 0x148   : > { %2498 = vrot.lane.b32.xlu1 %v2497_v60, %s2643_s21  ;;  %s2552_s21 = scalar_lea.vmem %s2551_s28, 4096 }
 0x18c   : > { %v2404_v53 = vpop.permute.xlu0 %2403 }
 0x18d   : > { %v2406_v61 = vunpack.i.h.bf16 %v2404_v53  ;;  %v2405_v63 = vunpack.i.l.bf16 %v2404_v53 }
 0x18f   : > { %v2409_v7 = vpop.permute.xlu1 %2408  ;;  %v1025_v14 = vsel %vm1018_vm4, %v830_v8, %v2405_v63  ;;  %v1026_v17 = vsel %vm1018_vm4, %v2942_v41, %v2406_v61 }
 0x190   : > { %v2411_v9 = vunpack.i.h.bf16 %v2409_v7  ;;  %v2410_v13 = vunpack.i.l.bf16 %v2409_v7 }
 0x192   : > { %v1046_v18 = vsel %vm1039_vm5, %v1025_v14, %v2410_v13  ;;  %v1047_v25 = vsel %vm1039_vm5, %v1026_v17, %v2411_v9  ;;  %v834_v17 = vsel %vm776_vm2, 0.0, %v798_v57 }
 0x193   : > { %v3108_v35 = vpack.c.bf16 %v1047_v25, %v1046_v18 }
 0x195   : > { %2195 = vmatprep.mubr.msk.bf16.mxu1 %vm1131_vm6, %v3108_v35  ;;  %v2414_v10 = vpop.permute.xlu0 %2413 }
 0x196   : > { %v2416_v46 = vunpack.i.h.bf16 %v2414_v10  ;;  %v2415_v23 = vunpack.i.l.bf16 %v2414_v10 }
 0x198   : > { %v2429_v48 = vpop.permute.xlu1 %2428  ;;  %v1027_v22 = vsel %vm1018_vm4, %v831_v52, %v2415_v23  ;;  %v1028_v24 = vsel %vm1018_vm4, %v3008_v44, %v2416_v46 }
 0x199   : > { %v2431_v12 = vunpack.i.h.bf16 %v2429_v48  ;;  %v2430_v41 = vunpack.i.l.bf16 %v2429_v48  ;;  %v2419_v20 = vpop.permute.xlu0 %2418 }
 0x19a   : > { %v2421_v11 = vunpack.i.h.bf16 %v2419_v20  ;;  %v2420_v2 = vunpack.i.l.bf16 %v2419_v20  ;;  %v835_v20 = vsel %vm776_vm2, 0.0, %v801_v28  ;;  %v827_v28 = vsel %vm776_vm2, 0.0, %v777_v59 }
 0x19b   : > { %v1048_v21 = vsel %vm1039_vm5, %v1027_v22, %v2430_v41  ;;  %v1049_v29 = vsel %vm1039_vm5, %v1028_v24, %v2431_v12 }
 0x19c   : > { %v3120_v40 = vpack.c.bf16 %v1049_v29, %v1048_v21  ;;  %v1030_v36 = vsel %vm1018_vm4, %v2996_v31, %v2421_v11  ;;  %v1029_v39 = vsel %vm1018_vm4, %v832_v33, %v2420_v2  ;;  %v833_v31 = vsel %vm776_vm2, 0.0, %v795_v5 }
 0x19d   : > { %v2424_v4 = vpop.permute.xlu0 %2423  ;;  %v2439_v30 = vpop.permute.xlu1 %2438 }
 0x19e   : > { %v2426_v34 = vunpack.i.h.bf16 %v2424_v4  ;;  %v2425_v44 = vunpack.i.l.bf16 %v2424_v4  ;;  %2196 = vmatmul.mubr.msk.bf16.vlgmr.msra.gmra.mrb[0].mxu1 %vm1131_vm6, %v3120_v40  ;;  %v2441_v1 = vunpack.i.h.bf16 %v2439_v30  ;;  %v2440_v50 = vunpack.i.l.bf16 %v2439_v30 }
 0x19f   : > { %2208 = vmatpush3.bf16.msra.mxu1 %v2983_v3 }
 0x1a0   : > { %v1050_v51 = vsel %vm1039_vm5, %v1029_v39, %v2425_v44  ;;  %v1051_v49 = vsel %vm1039_vm5, %v1030_v36, %v2426_v34  ;;  %2209 = vmatprep.subr.bf16.mxu1 %v2517_v56  ;;  %v1032_v3 = vsel %vm1018_vm4, %v3042_v0, %v2441_v1  ;;  %v1031_v7 = vsel %vm1018_vm4, %v833_v31, %v2440_v50  ;;  %v2519_v0 = vld [vmem:[%s3409_s5 + $0x18] sm:$0xff]  }
 0x1a1   : > { %v3139_v60 = vpack.c.bf16 %v1051_v49, %v1050_v51  ;;  %v2434_v42 = vpop.permute.xlu0 %2433  ;;  %v2454_v53 = vpop.permute.xlu1 %2453 }
 0x1a2   : > { %v2456_v61 = vunpack.i.h.bf16 %v2454_v53  ;;  %v2455_v63 = vunpack.i.l.bf16 %v2454_v53  ;;  %v2436_v8 = vunpack.i.h.bf16 %v2434_v42  ;;  %v2435_v9 = vunpack.i.l.bf16 %v2434_v42  ;;  %v2522_v53 = vld [vmem:[%s3409_s5 + $0x60] sm:$0xff]  }
 0x1a3   : > { %2199 = vmatprep.mubr.msk.bf16.mxu1 %vm1131_vm6, %v3139_v60  ;;  %2210 = vmatpush3.bf16.msra.mxu1 %v2517_v56 }
 0x1a4   : > { %v1052_v13 = vsel %vm1039_vm5, %v1031_v7, %v2455_v63  ;;  %v1053_v14 = vsel %vm1039_vm5, %v1032_v3, %v2456_v61  ;;  %2211 = vmatprep.subr.bf16.mxu1 %v2518_v62  ;;  %v1034_v46 = vsel %vm1018_vm4, %v3031_v32, %v2436_v8  ;;  %v1033_v23 = vsel %vm1018_vm4, %v834_v17, %v2435_v9  ;;  %v2520_v32 = vld [vmem:[%s3409_s5 + $0x20] sm:$0xff]  }
 0x1a5   : > { %v3151_v45 = vpack.c.bf16 %v1053_v14, %v1052_v13  ;;  %v2444_v5 = vpop.permute.xlu0 %2443 }
 0x1a6   : > { %v2446_v18 = vunpack.i.h.bf16 %v2444_v5  ;;  %v2445_v25 = vunpack.i.l.bf16 %v2444_v5  ;;  %v2459_v10 = vpop.permute.xlu1 %2458 }
 0x1a7   : > { %2200 = vmatmul.mubr.msk.bf16.gmra.mrb[4].mxu1 %vm1131_vm6, %v3151_v45  ;;  %v2461_v12 = vunpack.i.h.bf16 %v2459_v10  ;;  %v2460_v41 = vunpack.i.l.bf16 %v2459_v10 }
 0x1a8   : > { %v1054_v48 = vsel %vm1039_vm5, %v1033_v23, %v2445_v25  ;;  %v1055_v52 = vsel %vm1039_vm5, %v1034_v46, %v2446_v18  ;;  %2212 = vmatpush3.bf16.msra.mxu1 %v2518_v62 }
 0x1a9   : > { %v3166_v38 = vpack.c.bf16 %v1055_v52, %v1054_v48  ;;  %v2449_v57 = vpop.permute.xlu0 %2448  ;;  %2213 = vmatprep.subr.bf16.mxu1 %v2519_v0  ;;  %v1036_v2 = vsel %vm1018_vm4, %v3071_v37, %v2461_v12  ;;  %v1035_v56 = vsel %vm1018_vm4, %v835_v20, %v2460_v41  ;;  %v2521_v37 = vld [vmem:[%s3409_s5 + $0x28] sm:$0xff]  }
 0x1aa   : > { %v2464_v22 = vpop.permute.xlu1 %2463  ;;  %v2451_v29 = vunpack.i.h.bf16 %v2449_v57  ;;  %v2450_v11 = vunpack.i.l.bf16 %v2449_v57 }
 0x1ab   : > { %v2466_v24 = vunpack.i.h.bf16 %v2464_v22  ;;  %v2465_v21 = vunpack.i.l.bf16 %v2464_v22  ;;  %2203 = vmatprep.mubr.msk.bf16.mxu1 %vm1131_vm6, %v3166_v38 }
 0x1ac   : > { %2214 = vmatpush3.bf16.msra.mxu1 %v2519_v0  ;;  %v1019_v39 = vsel %vm1018_vm4, %v827_v28, %v2450_v11  ;;  %v1020_v1 = vsel %vm1018_vm4, %v2926_v26, %v2451_v29  ;;  %v828_v26 = vsel %vm776_vm2, 0.0, %v780_v19  ;;  %v2523_v19 = vld [vmem:[%s3409_s5 + $0x68] sm:$0xff]   ;;  %v2045_v11 = vld [vmem:[%s3410_s6] ss:$0 sm:$0xff] }
 0x1ad   : > { %v1056_v4 = vsel %vm1039_vm5, %v1035_v56, %v2465_v21  ;;  %v1057_v6 = vsel %vm1039_vm5, %v1036_v2, %v2466_v24  ;;  %v2474_v30 = vpop.permute.xlu0 %2473  ;;  %2215 = vmatprep.subr.bf16.mxu1 %v2520_v32  ;;  %v2525_v24 = vld [vmem:[%s3409_s5 + $0x78] sm:$0xff]  }
 0x1ae   : > { %v3184_v33 = vpack.c.bf16 %v1057_v6, %v1056_v4  ;;  %v2469_v34 = vpop.permute.xlu1 %2468  ;;  %v2476_v44 = vunpack.i.h.bf16 %v2474_v30  ;;  %v2475_v36 = vunpack.i.l.bf16 %v2474_v30 }
 0x1af   : > { %v2471_v50 = vunpack.i.h.bf16 %v2469_v34  ;;  %v2470_v51 = vunpack.i.l.bf16 %v2469_v34 }
 0x1b0   : > { %v1040_v55 = vsel %vm1039_vm5, %v1019_v39, %v2475_v36  ;;  %v1041_v59 = vsel %vm1039_vm5, %v1020_v1, %v2476_v44  ;;  %2204 = vmatmul.mubr.msk.bf16.gmra.mrb[8].mxu1 %vm1131_vm6, %v3184_v33 }
 0x1b1   : > { %v1060_v49 = vpack.c.bf16 %v1041_v59, %v1040_v55  ;;  %2216 = vmatpush3.bf16.msra.mxu1 %v2520_v32  ;;  %v2484_v62 = vpop.permute.xlu0 %2483  ;;  %v1022_v63 = vsel %vm1018_vm4, %v2966_v54, %v2471_v50  ;;  %v1021_v3 = vsel %vm1018_vm4, %v828_v26, %v2470_v51  ;;  %v829_v54 = vsel %vm776_vm2, 0.0, %v783_v27 }
 0x1b2   : > { %v2479_v42 = vpop.permute.xlu1 %2478  ;;  %2217 = vmatprep.subr.bf16.mxu1 %v2521_v37  ;;  %v2486_v7 = vunpack.i.h.bf16 %v2484_v62  ;;  %v2485_v8 = vunpack.i.l.bf16 %v2484_v62 }
 0x1b3   : > { %v2481_v31 = vunpack.i.h.bf16 %v2479_v42  ;;  %v2480_v61 = vunpack.i.l.bf16 %v2479_v42  ;;  %2219 = vmatprep.mubr.msk.bf16.mxu1 %vm1131_vm6, %v1060_v49 }
 0x1b4   : > { %v1024_v18 = vsel %vm1018_vm4, %v2975_v58, %v2486_v7  ;;  %v1023_v25 = vsel %vm1018_vm4, %v829_v54, %v2485_v8  ;;  %v2524_v58 = vld [vmem:[%s3409_s5 + $0x70] sm:$0xff]  }
 0x1b5   : > { %v1042_v9 = vsel %vm1039_vm5, %v1021_v3, %v2480_v61  ;;  %v1043_v13 = vsel %vm1039_vm5, %v1022_v63, %v2481_v31  ;;  %2218 = vmatpush3.bf16.msra.mxu1 %v2521_v37  ;;  %v2494_v14 = vpop.permute.xlu0 %2493 }
 0x1b6   : > { %v1061_v47 = vpack.c.bf16 %v1043_v13, %v1042_v9  ;;  %v2489_v5 = vpop.permute.xlu1 %2488  ;;  %2235 = vmatprep.subr.bf16.mxu1 %v2522_v53  ;;  %v2496_v10 = vunpack.i.h.bf16 %v2494_v14  ;;  %v2495_v46 = vunpack.i.l.bf16 %v2494_v14 }
 0x1b7   : > { %v2491_v0 = vunpack.i.h.bf16 %v2489_v5  ;;  %v2490_v17 = vunpack.i.l.bf16 %v2489_v5 }
 0x1b8   : > { %2191 = vmatprep.mubr.msk.bf16.mxu0 %vm1131_vm6, %v1061_v47  ;;  %2220 = vmatmul.mubr.msk.bf16.vlgmr.msra.gmra.mrb[12].mxu1 %vm1131_vm6, %v1061_v47  ;;  %v1038_v41 = vsel %vm1018_vm4, %v3063_v43, %v2496_v10  ;;  %v1037_v57 = vsel %vm1018_vm4, %v3057_v16, %v2495_v46  ;;  %v2526_v16 = vld [vmem:[%s3409_s5 + $0x80] sm:$0xff]   ;;  %v2527_v43 = vld [vmem:[%s3409_s5 + $0x88] sm:$0xff]  }
 0x1b9   : > { %v1044_v23 = vsel %vm1039_vm5, %v1023_v25, %v2490_v17  ;;  %v1045_v48 = vsel %vm1039_vm5, %v1024_v18, %v2491_v0  ;;  %2236 = vmatpush3.bf16.msra.mxu1 %v2522_v53 }
 0x1ba   : > { %v1062_v15 = vpack.c.bf16 %v1045_v48, %v1044_v23  ;;  %v2499_v27 = vpop.permute.xlu1 %2498  ;;  %2237 = vmatprep.subr.bf16.mxu1 %v2523_v19 }
 0x1bb   : > { %v2501_v52 = vunpack.i.h.bf16 %v2499_v27  ;;  %v2500_v12 = vunpack.i.l.bf16 %v2499_v27 }
 0x1bc   : > { %2192 = vmatmul.mubr.msk.bf16.vlgmr.msra.gmra.mrb[20].mxu0 %vm1131_vm6, %v1062_v15  ;;  %2223 = vmatprep.mubr.msk.bf16.mxu1 %vm1131_vm6, %v1062_v15 }
 0x1bd   : > { %v1058_v32 = vsel %vm1039_vm5, %v1037_v57, %v2500_v12  ;;  %v1059_v20 = vsel %vm1039_vm5, %v1038_v41, %v2501_v52  ;;  %2238 = vmatpush3.bf16.msra.mxu1 %v2523_v19 }
 0x1be   : > { %v1069_v22 = vpack.c.bf16 %v1059_v20, %v1058_v32  ;;  %2239 = vmatprep.subr.bf16.mxu1 %v2524_v58 }
 0x1c0   : > { %2224 = vmatmul.mubr.msk.bf16.gmra.mrb[0].mxu1 %vm1131_vm6, %v3108_v35 }
 0x1c1   : > { %2227 = vmatprep.mubr.msk.bf16.mxu1 %vm1131_vm6, %v3120_v40  ;;  %2240 = vmatpush3.bf16.msra.mxu1 %v2524_v58 }
 0x1c2   : > { %2241 = vmatprep.subr.bf16.mxu1 %v2525_v24 }
 0x1c5   : > { %2242 = vmatpush3.bf16.msra.mxu1 %v2525_v24 }
 0x1c6   : > { %2243 = vmatprep.subr.bf16.mxu1 %v2526_v16 }
 0x1c8   : > { %2228 = vmatmul.mubr.msk.bf16.gmra.mrb[4].mxu1 %vm1131_vm6, %v3139_v60 }
 0x1c9   : > { %2231 = vmatprep.mubr.msk.bf16.mxu1 %vm1131_vm6, %v3151_v45  ;;  %2244 = vmatpush3.bf16.msra.mxu1 %v2526_v16 }
 0x1ca   : > { %2245 = vmatprep.subr.bf16.mxu1 %v2527_v43 }
 0x1cd   : > { %2246 = vmatpush3.bf16.msra.mxu1 %v2527_v43 }
 0x1d0   : > { %2232 = vmatmul.mubr.msk.bf16.gmra.mrb[8].mxu1 %vm1131_vm6, %v3166_v38 }
 0x1d1   : > { %2247 = vmatprep.mubr.msk.bf16.mxu1 %vm1131_vm6, %v1062_v15 }
 0x1d8   : > { %2248 = vmatmul.mubr.msk.bf16.vlgmr.msra.gmra.mrb[12].mxu1 %vm1131_vm6, %v3108_v35  ;;  %v2528_v35 = vld [vmem:[%s3411_s7] sm:$0xff]  }
 0x1d9   : > { %2251 = vmatprep.mubr.msk.bf16.mxu1 %vm1131_vm6, %v3120_v40  ;;  %v2529_v40 = vld [vmem:[%s3411_s7 + $0x8] sm:$0xff]   ;;  %2263 = vmatprep.subr.bf16.mxu0 %v2528_v35 }
 0x1da   : > { %2264 = vmatpush3.bf16.msra.mxu0 %v2528_v35 }
 0x1db   : > { %2265 = vmatprep.subr.bf16.mxu0 %v2529_v40 }
 0x1de   : > { %2266 = vmatpush3.bf16.msra.mxu0 %v2529_v40 }
 0x1e0   : > { %2252 = vmatmul.mubr.msk.bf16.gmra.mrb[0].mxu1 %vm1131_vm6, %v3139_v60 }
 0x1e1   : > { %2255 = vmatprep.mubr.msk.bf16.mxu1 %vm1131_vm6, %v3151_v45 }
 0x1e8   : > { %2256 = vmatmul.mubr.msk.bf16.gmra.mrb[4].mxu1 %vm1131_vm6, %v3166_v38 }
 0x1e9   : > { %2259 = vmatprep.mubr.msk.bf16.mxu1 %vm1131_vm6, %v3184_v33 }
 0x1f0   : > { %2260 = vmatmul.mubr.msk.bf16.gmra.mrb[8].mxu1 %vm1131_vm6, %v1069_v22 }
 0x28f   : > { %v2193_v60 = vpop.f32.mrb[20].mxu0 }
 0x290   : > { %v1190_v45 = vpop.f32.mrb[21].mxu0 }
 0x291   : > { %v2194_v38 = vpop.f32.mrb[22].mxu0 }
 0x292   : > { %v1193_v21 = vpop.f32.mrb[23].mxu0 }
 0x2ab   : > { %v2249_v29 = vpop.f32.mrb[12].mxu1 }
 0x2ac   : > { %v2295_v2 = vadd.f32 %v2249_v29, %v2193_v60  ;;  %v1475_v56 = vpop.f32.mrb[13].mxu1 }
 0x2ad   : > { %v2296_v4 = vadd.f32 %v1475_v56, %v1190_v45  ;;  %v2250_v6 = vpop.f32.mrb[14].mxu1  ;;  %v3286_v45 = vld [vmem:[%s3412_s8] ss:$0 sm:$0xff]  ;;  %v2530_v56 = vld [vmem:[%s2807_s18 + $0x10] sm:$0xff] }
 0x2ae   : > { %v1563_v30 = vadd.f32 %v2295_v2, %v2045_v11  ;;  %v2297_v28 = vadd.f32 %v2250_v6, %v2194_v38  ;;  %v1478_v33 = vpop.f32.mrb[15].mxu1 }
 0x2af   : > { %v1561_v34 = vadd.f32 %v2296_v4, %v2045_v11  ;;  %v2298_v44 = vadd.f32 %v1478_v33, %v1193_v21 }
 0x2b0   : > { %v1564_v36 = vadd.f32 %v2297_v28, %v2045_v11  ;;  %v1579_v39 = vmax.f32 %v1563_v30, 0.0  ;;  %v2531_v28 = vld [vmem:[%s2807_s18] sm:$0xff] }
 0x2b1   : > { %v1562_v37 = vadd.f32 %v2298_v44, %v2045_v11  ;;  %v1577_v50 = vmax.f32 %v1561_v34, 0.0 }
 0x2b2   : > { %v1580_v1 = vmax.f32 %v1564_v36, 0.0  ;;  %v2532_v36 = vld [vmem:[%s2807_s18 + $0x18] sm:$0xff] }
 0x2b3   : > { %v1578_v51 = vmax.f32 %v1562_v37, 0.0  ;;  %v2253_v55 = vpop.f32.mrb[0].mxu1 }
 0x2b4   : > { %v1594_v59 = vpack.c.bf16 %v1580_v1, %v1579_v39  ;;  %v1567_v49 = vadd.f32 %v2253_v55, %v2045_v11  ;;  %v1491_v62 = vpop.f32.mrb[1].mxu1  ;;  %v2533_v1 = vld [vmem:[%s2807_s18 + $0x8] sm:$0xff] }
 0x2b5   : > { %v1593_v42 = vpack.c.bf16 %v1578_v51, %v1577_v50  ;;  %v1565_v53 = vadd.f32 %v2045_v11, %v1491_v62  ;;  %v2254_v26 = vpop.f32.mrb[2].mxu1 }
 0x2b6   : > { %v1568_v31 = vadd.f32 %v2254_v26, %v2045_v11  ;;  %v1494_v61 = vpop.f32.mrb[3].mxu1  ;;  %v1583_v3 = vmax.f32 %v1567_v49, 0.0  ;;  %v2534_v26 = vld [vmem:[%s2807_s18 + $0x30] sm:$0xff] }
 0x2b7   : > { %v1566_v63 = vadd.f32 %v2045_v11, %v1494_v61  ;;  %2267 = vmatprep.mubr.msk.bf16.mxu0 %vm1018_vm4, %v1593_v42  ;;  %v1581_v8 = vmax.f32 %v1565_v53, 0.0 }
 0x2b8   : > { %v1584_v7 = vmax.f32 %v1568_v31, 0.0  ;;  %2268 = vmatmul.mubr.msk.bf16.vlgmr.msra.gmra.mrb[24].mxu0 %vm1018_vm4, %v1594_v59 }
 0x2b9   : > { %v1582_v9 = vmax.f32 %v1566_v63, 0.0 }
 0x2ba   : > { %v1596_v13 = vpack.c.bf16 %v1584_v7, %v1583_v3  ;;  %v2535_v3 = vld [vmem:[%s2807_s18 + $0x20] sm:$0xff] }
 0x2bb   : > { %v1595_v14 = vpack.c.bf16 %v1582_v9, %v1581_v8  ;;  %v2257_v47 = vpop.f32.mrb[4].mxu1 }
 0x2bc   : > { %v1571_v5 = vadd.f32 %v2257_v47, %v2045_v11  ;;  %v1507_v19 = vpop.f32.mrb[5].mxu1 }
 0x2bd   : > { %v1569_v54 = vadd.f32 %v2045_v11, %v1507_v19  ;;  %v2258_v0 = vpop.f32.mrb[6].mxu1  ;;  %2271 = vmatprep.mubr.msk.bf16.mxu0 %vm1018_vm4, %v1595_v14 }
 0x2be   : > { %v1572_v17 = vadd.f32 %v2258_v0, %v2045_v11  ;;  %v1510_v18 = vpop.f32.mrb[7].mxu1  ;;  %v1587_v10 = vmax.f32 %v1571_v5, 0.0  ;;  %v2537_v5 = vld [vmem:[%s2807_s18 + $0x28] sm:$0xff] }
 0x2bf   : > { %v1570_v25 = vadd.f32 %v2045_v11, %v1510_v18  ;;  %v1585_v23 = vmax.f32 %v1569_v54, 0.0 }
 0x2c0   : > { %v1588_v46 = vmax.f32 %v1572_v17, 0.0  ;;  %2272 = vmatmul.mubr.msk.bf16.gmra.mrb[28].mxu0 %vm1018_vm4, %v1596_v13  ;;  %v2536_v13 = vld [vmem:[%s2807_s18 + $0x38] sm:$0xff] }
 0x2c1   : > { %v1586_v48 = vmax.f32 %v1570_v25, 0.0 }
 0x2c2   : > { %v1598_v15 = vpack.c.bf16 %v1588_v46, %v1587_v10 }
 0x2c3   : > { %v1597_v27 = vpack.c.bf16 %v1586_v48, %v1585_v23  ;;  %v2261_v58 = vpop.f32.mrb[8].mxu1  ;;  %v2538_v23 = vld [vmem:[%s2807_s18 + $0x50] sm:$0xff] }
 0x2c4   : > { %v1575_v52 = vadd.f32 %v2261_v58, %v2045_v11  ;;  %v1523_v12 = vpop.f32.mrb[9].mxu1  ;;  %v2539_v58 = vld [vmem:[%s2807_s18 + $0x40] sm:$0xff] }
 0x2c5   : > { %v1573_v41 = vadd.f32 %v2045_v11, %v1523_v12  ;;  %v2262_v57 = vpop.f32.mrb[10].mxu1  ;;  %2275 = vmatprep.mubr.msk.bf16.mxu0 %vm1018_vm4, %v1597_v27 }
 0x2c6   : > { %v1576_v32 = vadd.f32 %v2262_v57, %v2045_v11  ;;  %v1526_v20 = vpop.f32.mrb[11].mxu1  ;;  %v1591_v24 = vmax.f32 %v1575_v52, 0.0  ;;  %v2540_v57 = vld [vmem:[%s2807_s18 + $0x58] sm:$0xff] }
 0x2c7   : > { %v1574_v22 = vadd.f32 %v2045_v11, %v1526_v20  ;;  %v1589_v43 = vmax.f32 %v1573_v41, 0.0 }
 0x2c8   : > { %v1592_v16 = vmax.f32 %v1576_v32, 0.0  ;;  %2276 = vmatmul.mubr.msk.bf16.gmra.mrb[32].mxu0 %vm1018_vm4, %v1598_v15 }
 0x2c9   : > { %v1590_v35 = vmax.f32 %v1574_v22, 0.0  ;;  %v2541_v22 = vld [vmem:[%s2807_s18 + $0x48] sm:$0xff] }
 0x2ca   : > { %v1600_v40 = vpack.c.bf16 %v1592_v16, %v1591_v24 }
 0x2cb   : > { %v1599_v60 = vpack.c.bf16 %v1590_v35, %v1589_v43 }
 0x2cd   : > { %2279 = vmatprep.mubr.msk.bf16.mxu0 %vm1018_vm4, %v1599_v60 }
 0x2d0   : > { %2280 = vmatmul.mubr.msk.bf16.gmra.mrb[36].mxu0 %vm1018_vm4, %v1600_v40 }
 0x38b   : > { %v2269_v38 = vpop.f32.mrb[24].mxu0 }
 0x38c   : > { %v1691_v21 = vadd.f32 %v2269_v38, %v3286_v45  ;;  %v1682_v29 = vpop.f32.mrb[25].mxu0 }
 0x38d   : > { %v1683_v11 = vadd.f32 %v3286_v45, %v1682_v29  ;;  %v2270_v2 = vpop.f32.mrb[26].mxu0  ;;  %v2542_v29 = vld [vmem:[%s2807_s18 + $0x70] sm:$0xff] }
 0x38e   : > { %v1747_v4 = vadd.f32 %v2530_v56, %v1691_v21  ;;  %v1694_v6 = vadd.f32 %v2270_v2, %v3286_v45  ;;  %v1685_v30 = vpop.f32.mrb[27].mxu0 }
 0x38f   : > { %v1745_v33 = vadd.f32 %v2531_v28, %v1683_v11  ;;  %v1686_v34 = vadd.f32 %v3286_v45, %v1685_v30 }
 0x390   : > { %v1763_v44 = vmax.f32 %v1747_v4, 0.0  ;;  %v1748_v37 = vadd.f32 %v2532_v36, %v1694_v6  ;;  %v2543_v4 = vld [vmem:[%s2807_s18 + $0x60] sm:$0xff]  ;;  %v2545_v36 = vld [vmem:[%s2807_s18 + $0x68] sm:$0xff] }
 0x391   : > { %v1761_v39 = vmax.f32 %v1745_v33, 0.0  ;;  %v1746_v50 = vadd.f32 %v2533_v1, %v1686_v34  ;;  %v2544_v33 = vld [vmem:[%s2807_s18 + $0x78] sm:$0xff]  ;;  %s2546_s18 = scalar_lea.vmem %s3345_s13, 2048 }
 0x392   : > { %1779 = vst [vmem:[%s3298_s30 + $0x10] sm:$0xff] %v1763_v44  ;;  %v1764_v51 = vmax.f32 %v1748_v37, 0.0  ;;  %p2547_p6 = scmp.ne.s32.totalorder %s3345_s13, %s2546_s18  ;;  %p2554_p11 = scmp.lt.s32.totalorder %s2552_s21, %s2546_s18 }
 0x393   : > { %1777 = vst [vmem:[%s3298_s30] sm:$0xff] %v1761_v39  ;;  %v1762_v55 = vmax.f32 %v1746_v50, 0.0  ;;  %v2273_v59 = vpop.f32.mrb[28].mxu0 }
 0x394   : > { %1780 = vst [vmem:[%s3298_s30 + $0x18] sm:$0xff] %v1764_v51  ;;  %v1707_v49 = vadd.f32 %v2273_v59, %v3286_v45  ;;  %v1698_v62 = vpop.f32.mrb[29].mxu0  ;;  %p2548_p7 = pnand %p2547_p6, %p2748_p3  ;;  %p2555_p12 = por %p2554_p11, %p2553_p10 }
 0x395   : > { %1778 = vst [vmem:[%s3298_s30 + $0x8] sm:$0xff] %v1762_v55  ;;  %v1699_v42 = vadd.f32 %v3286_v45, %v1698_v62  ;;  %v2274_v53 = vpop.f32.mrb[30].mxu0 }
 0x396   : > { %v1751_v31 = vadd.f32 %v2534_v26, %v1707_v49  ;;  %v1710_v61 = vadd.f32 %v2274_v53, %v3286_v45  ;;  %v1701_v63 = vpop.f32.mrb[31].mxu0  ;;  %p2549_p9 = pneg %p2548_p7 }
 0x397   : > { %v1749_v7 = vadd.f32 %v2535_v3, %v1699_v42  ;;  %v1702_v8 = vadd.f32 %v3286_v45, %v1701_v63 }
 0x398   : > { %v1767_v9 = vmax.f32 %v1751_v31, 0.0  ;;  %v1752_v14 = vadd.f32 %v2536_v13, %v1710_v61  ;;  %p2556_p13 = pnand %p2555_p12, %p2549_p9 }
 0x399   : > { %v1765_v47 = vmax.f32 %v1749_v7, 0.0  ;;  %v1750_v19 = vadd.f32 %v2537_v5, %v1702_v8 }
 0x39a   : > { %1783 = vst [vmem:[%s3298_s30 + $0x30] sm:$0xff] %v1767_v9  ;;  %v1768_v54 = vmax.f32 %v1752_v14, 0.0 }
 0x39b   : > { %1781 = vst [vmem:[%s3298_s30 + $0x20] sm:$0xff] %v1765_v47  ;;  %v1766_v0 = vmax.f32 %v1750_v19, 0.0  ;;  %v2277_v17 = vpop.f32.mrb[32].mxu0 }
 0x39c   : > { %1784 = vst [vmem:[%s3298_s30 + $0x38] sm:$0xff] %v1768_v54  ;;  %v1723_v18 = vadd.f32 %v2277_v17, %v3286_v45  ;;  %v1714_v25 = vpop.f32.mrb[33].mxu0 }
 0x39d   : > { %1782 = vst [vmem:[%s3298_s30 + $0x28] sm:$0xff] %v1766_v0  ;;  %v1715_v10 = vadd.f32 %v3286_v45, %v1714_v25  ;;  %v2278_v46 = vpop.f32.mrb[34].mxu0 }
 0x39e   : > { %v1755_v48 = vadd.f32 %v2538_v23, %v1723_v18  ;;  %v1726_v15 = vadd.f32 %v2278_v46, %v3286_v45  ;;  %v1717_v27 = vpop.f32.mrb[35].mxu0 }
 0x39f   : > { %v1753_v52 = vadd.f32 %v2539_v58, %v1715_v10  ;;  %v1718_v12 = vadd.f32 %v3286_v45, %v1717_v27 }
 0x3a0   : > { %v1771_v41 = vmax.f32 %v1755_v48, 0.0  ;;  %v1756_v32 = vadd.f32 %v2540_v57, %v1726_v15 }
 0x3a1   : > { %v1769_v20 = vmax.f32 %v1753_v52, 0.0  ;;  %v1754_v24 = vadd.f32 %v2541_v22, %v1718_v12 }
 0x3a2   : > { %1787 = vst [vmem:[%s3298_s30 + $0x50] sm:$0xff] %v1771_v41  ;;  %v1772_v16 = vmax.f32 %v1756_v32, 0.0 }
 0x3a3   : > { %1785 = vst [vmem:[%s3298_s30 + $0x40] sm:$0xff] %v1769_v20  ;;  %v1770_v43 = vmax.f32 %v1754_v24, 0.0  ;;  %v2281_v35 = vpop.f32.mrb[36].mxu0 }
 0x3a4   : > { %1788 = vst [vmem:[%s3298_s30 + $0x58] sm:$0xff] %v1772_v16  ;;  %v1739_v40 = vadd.f32 %v2281_v35, %v3286_v45  ;;  %v1730_v60 = vpop.f32.mrb[37].mxu0 }
 0x3a5   : > { %1786 = vst [vmem:[%s3298_s30 + $0x48] sm:$0xff] %v1770_v43  ;;  %v1731_v38 = vadd.f32 %v3286_v45, %v1730_v60  ;;  %v2282_v21 = vpop.f32.mrb[38].mxu0 }
 0x3a6   : > { %v1759_v11 = vadd.f32 %v2542_v29, %v1739_v40  ;;  %v1742_v2 = vadd.f32 %v2282_v21, %v3286_v45  ;;  %v1733_v56 = vpop.f32.mrb[39].mxu0 }
 0x3a7   : > { %v1757_v6 = vadd.f32 %v2543_v4, %v1731_v38  ;;  %v1734_v30 = vadd.f32 %v3286_v45, %v1733_v56 }
 0x3a8   : > { %v1775_v28 = vmax.f32 %v1759_v11, 0.0  ;;  %v1760_v34 = vadd.f32 %v2544_v33, %v1742_v2 }
 0x3a9   : > { %v1773_v44 = vmax.f32 %v1757_v6, 0.0  ;;  %v1758_v37 = vadd.f32 %v2545_v36, %v1734_v30 }
 0x3aa   : > { %1791 = vst [vmem:[%s3298_s30 + $0x70] sm:$0xff] %v1775_v28  ;;  %v1776_v39 = vmax.f32 %v1760_v34, 0.0 }
 0x3ab   : > { %1789 = vst [vmem:[%s3298_s30 + $0x60] sm:$0xff] %v1773_v44  ;;  %v1774_v45 = vmax.f32 %v1758_v37, 0.0 }
 0x3ac   : > { %1792 = vst [vmem:[%s3298_s30 + $0x78] sm:$0xff] %v1776_v39 }
 0x3ad   : > { %1790 = vst [vmem:[%s3298_s30 + $0x68] sm:$0xff] %v1774_v45 }
 0x3ae   : > { %2559 = shalt.err (!%p2556_p13)
}
 0x3af   : > { %s2560_s15 = scalar_lea.hbm %s3343_s26, 2048  ;;  %s2564_s14 = scalar_lea.hbm %s3413_s9, 8192 }
 0x3b0   : > { %p2561_p0 = scmp.ne.s32.totalorder %s3343_s26, %s2560_s15  ;;  %p2565_p4 = scmp.lt.u32.totalorder %s3343_s26, %s3413_s9 }
 0x3b1   : > { %p2566_p5 = scmp.lt.u32.totalorder %s2564_s14, %s2560_s15  ;;  %p2568_p7 = scmp.lt.u32.totalorder %s2560_s15, %s3343_s26 }
 0x3b2   : > { %p2562_p1 = pnand %p2561_p0, %p2748_p3 }
 0x3b3   : > { %p2567_p6 = por %p2566_p5, %p2565_p4 }
 0x3b4   : > { %p2563_p2 = pneg %p2562_p1 }
 0x3b5   : > { %p2569_p9 = por %p2568_p7, %p2567_p6 }
 0x3b7   : > { %p2570_p10 = pnand %p2569_p9, %p2563_p2 }
 0x3b9   : > { %2573 = shalt.err (!%p2570_p10)
}
 0x3ba   : > { %s2645_s17 = smov 128   ;;  %s2646_s24 = smov 8  }
 0x3bb   : > { %2327 = dma.vmem_to_hbm [thread:$0]  (%p2748_p3), %s3345_s13, 2048, %s3343_s26, %s3352_s25, %s2645_s17, %s2645_s17, %s2646_s24  }
 0x3bc PF: > { %s3436_s12 = sld [smem:[#allocation5_spill]]  ;;  %p2333_p11 = scmp.ge.s32.totalorder %s2640_s16, 2 }
 0x3be   : > { %p2330_p12 = pnand %p2333_p11, %p2757_p8 }
 0x3c2   : > { %s1825_s19 = sand.u32 1, %s3436_s12  }
 0x3c3   : > { %s1826_s18 = scalar_lea.sflag [#allocation3], %s1825_s19 }
 0x3c4   : > { %2607 = dma.done.wait (!%p2330_p12), %s1826_s18, 2048  }
 0x3c5   : > { %2609 = vsyncadd (!%p2330_p12), %s1826_s18, 4294965248  ;;  %s22_s16 = sadd.s32 1, %s2640_s16   ;;  %s3438_s20 = sld [smem:[#allocation6_spill]] }
 0x3c6   : > { %p19_p13 = scmp.ge.s32.totalorder %s22_s16, 6   ;;  %s3439_s11 = sld [smem:[#allocation12_spill]] }
 0x3c7   : > { %s3440_s12 = sld [smem:[#allocation7_spill]]  ;;  %s3441_s13 = sld [smem:[#allocation8_spill]] }
 0x3c8   : > { %s3442_s14 = sld [smem:[#allocation9_spill]]  ;;  %s3443_s15 = sld [smem:[#allocation10_spill]] }
 0x3c9   : > { %s3444_s30 = smov %s2616_s10  ;;  %21 = sbr.rel (!%p19_p13) target bundleno = 5 (0x5), region = 99 }
 0x3cb   : > { %s3445_s10 = smov %s3438_s20 }
 0x3d0   :  { %1831 = vsyncpa [#allocation3], 1 }
 0x3d1   :  { %1833 = vsyncpa [#allocation3 + $0x1], 1 }

</bundles_post_ra>
